<compile_context>
chip_gen: v7x
topology: tpu7x:2x2x1
jax: 0.10.0
libtpu: 0.0.40
codegen_flags: <defaults>
</compile_context>

<pallas_src>
import functools
import math

import jax
import jax.numpy as jnp
from jax.experimental import pallas as pl
from jax.experimental.pallas import tpu as pltpu


def _round_up(x, m):
    return ((x + m - 1) // m) * m


def _cdiv(a, b):
    return (a + b - 1) // b


# ---------------------------------------------------------------------------
# Kernel bodies
# ---------------------------------------------------------------------------

def _adj_block(adj_ref, *, tk, k_rem, compute_dtype):
    """Load the current adj block, zero the ragged K tail, cast for the MXU."""
    blk = adj_ref[...]
    if k_rem:  # static: only emitted when N is not a multiple of tk
        k = pl.program_id(1)
        nk = pl.num_programs(1)
        col = jax.lax.broadcasted_iota(jnp.int32, blk.shape, 1)
        limit = jnp.where(k == nk - 1, k_rem, tk)
        blk = jnp.where(col < limit, blk, jnp.zeros_like(blk))
    return blk.astype(compute_dtype)


def _feat_block(feat_ref, *, tk, feat_resident):
    """Current (tk, feat_pad) slice of the feature / support matrix."""
    if feat_resident:
        off = pl.multiple_of(pl.program_id(1) * tk, tk)
        return feat_ref[pl.ds(off, tk), :]
    return feat_ref[...]


def _gcn_kernel_fused(adj_ref, x_ref, w_ref, b_ref, out_ref, acc_ref, *,
                      tk, k_rem, feat_resident, compute_dtype):
    """acc += adj_blk @ x_blk over K; epilogue: out = acc @ W + bias."""
    k = pl.program_id(1)

    @pl.when(k == 0)
    def _():
        acc_ref[...] = jnp.zeros_like(acc_ref)

    adj_blk = _adj_block(adj_ref, tk=tk, k_rem=k_rem, compute_dtype=compute_dtype)
    x_blk = _feat_block(x_ref, tk=tk, feat_resident=feat_resident)
    acc_ref[...] += jnp.dot(adj_blk, x_blk, preferred_element_type=jnp.float32)

    @pl.when(k == pl.num_programs(1) - 1)
    def _():
        out_ref[...] = (
            jnp.dot(acc_ref[...].astype(compute_dtype), w_ref[...],
                    preferred_element_type=jnp.float32)
            + b_ref[...])


def _gcn_kernel_support(adj_ref, s_ref, b_ref, out_ref, *,
                        tk, k_rem, feat_resident, compute_dtype):
    """out (f32 block, revisited across K) += adj_blk @ support_blk; +bias last."""
    k = pl.program_id(1)

    @pl.when(k == 0)
    def _():
        out_ref[...] = jnp.zeros_like(out_ref)

    adj_blk = _adj_block(adj_ref, tk=tk, k_rem=k_rem, compute_dtype=compute_dtype)
    s_blk = _feat_block(s_ref, tk=tk, feat_resident=feat_resident)
    out_ref[...] += jnp.dot(adj_blk, s_blk, preferred_element_type=jnp.float32)

    @pl.when(k == pl.num_programs(1) - 1)
    def _():
        out_ref[...] += b_ref[...]


# ---------------------------------------------------------------------------
# VMEM budgeting
# ---------------------------------------------------------------------------

def _vmem_target_bytes():
    """~60% of this generation's VMEM (v5e/v6e: 128 MiB, v7x: 64 MiB)."""
    try:
        cap = int(getattr(pltpu.get_tpu_info(), "vmem_capacity_bytes",
                          64 * 1024 * 1024))
    except Exception:  # not on TPU / query unavailable -> conservative default
        cap = 64 * 1024 * 1024
    return max(16 * 1024 * 1024, min(int(cap * 0.6), 96 * 1024 * 1024))


def _vmem_need_bytes(n, tm, tk, feat_pad, of_pad, adj_itemsize, feat_itemsize,
                     apply_w, feat_resident):
    n_pad_k = _round_up(n, tk)
    adj_b = 2 * tm * tk * adj_itemsize                      # double-buffered
    if feat_resident:
        feat_b = 2 * n_pad_k * feat_pad * feat_itemsize     # resident (2 bufs)
    else:
        feat_b = 2 * tk * feat_pad * feat_itemsize
    out_b = 2 * tm * of_pad * 4                             # f32 output block
    w_b = 2 * feat_pad * of_pad * feat_itemsize if apply_w else 0
    acc_b = tm * feat_pad * 4 if apply_w else 0
    bias_b = 2 * 8 * of_pad * 4
    return adj_b + feat_b + out_b + w_b + acc_b + bias_b


# ---------------------------------------------------------------------------
# Wrapper
# ---------------------------------------------------------------------------

def graph_convolution(x, adj, weight, bias=None, *,
                      row_tile=512, k_tile=2048,
                      compute_dtype=jnp.bfloat16,
                      vmem_target_bytes=None,
                      feat_resident_budget_bytes=None):
    """Pallas GCN forward: adj @ (x @ weight) + bias."""
    n, in_f = x.shape
    assert weight.shape[0] == in_f
    out_f = weight.shape[1]
    assert adj.shape == (n, n)
    out_dtype = x.dtype

    if vmem_target_bytes is None:
        vmem_target_bytes = _vmem_target_bytes()
    if feat_resident_budget_bytes is None:
        feat_resident_budget_bytes = vmem_target_bytes // 3

    of_pad = _round_up(out_f, 128)
    feat_itemsize = jnp.dtype(compute_dtype).itemsize
    adj_itemsize = jnp.dtype(adj.dtype).itemsize

    # Contraction order: stream the narrower of {x, x @ W}.  Fall back to the
    # precomputed-support path if the resident weight block would be too big.
    apply_w_in_kernel = in_f < out_f
    if apply_w_in_kernel and (2 * _round_up(in_f, 128) * of_pad * feat_itemsize
                              > vmem_target_bytes // 4):
        apply_w_in_kernel = False
    feat_w = in_f if apply_w_in_kernel else out_f
    feat_pad = _round_up(feat_w, 128)

    # ---- tile selection -----------------------------------------------------
    # Large adj blocks amortise per-step overhead; tk stays a multiple of 256
    # (MXU contraction granule on v6e/v7x), tm a multiple of 128.
    tm = min(_round_up(row_tile, 128), _round_up(n, 128))
    tk = min(_round_up(k_tile, 256), _round_up(n, 256))
    # Give the "parallel" row axis >= 2 blocks (megacore / 2-TC sharding on v7x).
    if _cdiv(n, tm) < 2 and tm > 128:
        tm = max(128, _round_up(_cdiv(n, 2), 128))
    # Shrink tiles (tk first) until the VMEM footprint fits the budget.
    feat_resident = True
    for _ in range(16):
        n_pad_k = _round_up(n, tk)
        feat_resident = (2 * n_pad_k * feat_pad * feat_itemsize
                         <= feat_resident_budget_bytes)
        need = _vmem_need_bytes(n, tm, tk, feat_pad, of_pad, adj_itemsize,
                                feat_itemsize, apply_w_in_kernel, feat_resident)
        if need <= vmem_target_bytes:
            break
        if tk > 256:
            tk = max(256, tk // 2)
        elif tm > 128:
            tm = max(128, tm // 2)
        elif feat_resident_budget_bytes:
            feat_resident_budget_bytes = 0      # force streamed feature blocks
        else:
            break

    n_pad_k = _round_up(n, tk)
    grid = (_cdiv(n, tm), _cdiv(n, tk))
    k_rem = n % tk                               # ragged K tail, masked in-kernel

    # ---- O(N * width) wrapper-side prep; the (N, N) adj itself is untouched --
    if apply_w_in_kernel:
        feat = x.astype(compute_dtype)                                 # (N, in_f)
        w_op = jnp.pad(weight.astype(compute_dtype),
                       ((0, feat_pad - in_f), (0, of_pad - out_f)))
    else:
        w_cols = (jnp.pad(weight, ((0, 0), (0, of_pad - out_f)))
                  if of_pad != out_f else weight)
        feat = jnp.dot(x, w_cols,
                       preferred_element_type=jnp.float32).astype(compute_dtype)
    feat = jnp.pad(feat, ((0, n_pad_k - n), (0, feat_pad - feat.shape[1])))

    b = bias if bias is not None else jnp.zeros((out_f,), jnp.float32)
    b2d = jnp.pad(b.astype(jnp.float32), (0, of_pad - out_f)).reshape(1, of_pad)

    # ---- BlockSpecs ----------------------------------------------------------
    adj_spec = pl.BlockSpec((tm, tk), lambda i, k: (i, k))
    if feat_resident:
        feat_spec = pl.BlockSpec((n_pad_k, feat_pad), lambda i, k: (0, 0))
    else:
        feat_spec = pl.BlockSpec((tk, feat_pad), lambda i, k: (k, 0))
    bias_spec = pl.BlockSpec((1, of_pad), lambda i, k: (0, 0))
    out_spec = pl.BlockSpec((tm, of_pad), lambda i, k: (i, 0))

    static = dict(tk=tk, k_rem=k_rem, feat_resident=feat_resident,
                  compute_dtype=compute_dtype)
    if apply_w_in_kernel:
        kernel = functools.partial(_gcn_kernel_fused, **static)
        w_spec = pl.BlockSpec((feat_pad, of_pad), lambda i, k: (0, 0))
        in_specs = [adj_spec, feat_spec, w_spec, bias_spec]
        operands = (adj, feat, w_op, b2d)
        scratch_shapes = [pltpu.VMEM((tm, feat_pad), jnp.float32)]
    else:
        kernel = functools.partial(_gcn_kernel_support, **static)
        in_specs = [adj_spec, feat_spec, bias_spec]
        operands = (adj, feat, b2d)
        scratch_shapes = []

    out = pl.pallas_call(
        kernel,
        out_shape=jax.ShapeDtypeStruct((n, of_pad), jnp.float32),
        grid_spec=pltpu.PrefetchScalarGridSpec(
            num_scalar_prefetch=0,
            grid=grid,
            in_specs=in_specs,
            out_specs=out_spec,
            scratch_shapes=scratch_shapes,
        ),
        compiler_params=pltpu.CompilerParams(
            # Row axis is independent work (megacore / 2-TC sharding on v7x);
            # K axis carries the accumulation and must stay sequential.
            dimension_semantics=("parallel", "arbitrary"),
            vmem_limit_bytes=int(vmem_target_bytes),
        ),
    )(*operands)

    return out[:, :out_f].astype(out_dtype)


# ---------------------------------------------------------------------------
# References & self-test
# ---------------------------------------------------------------------------

def _reference_matched(x, adj, weight, bias, compute_dtype=jnp.bfloat16):
    """Mirror the kernel's cast points (bf16 operands, f32 accumulation)."""
    hp = jax.lax.Precision.HIGHEST
    in_f, out_f = weight.shape
    a = adj.astype(compute_dtype).astype(jnp.float32)
    if in_f < out_f:
        xx = x.astype(compute_dtype).astype(jnp.float32)
        acc = jnp.dot(a, xx, precision=hp)
        acc = acc.astype(compute_dtype).astype(jnp.float32)
        w = weight.astype(compute_dtype).astype(jnp.float32)
        out = jnp.dot(acc, w, precision=hp)
    else:
        s = jnp.dot(x, weight, preferred_element_type=jnp.float32)  # as wrapper
        s = s.astype(compute_dtype).astype(jnp.float32)
        out = jnp.dot(a, s, precision=hp)
    if bias is not None:
        out = out + bias
    return out


def _reference_f32(x, adj, weight, bias):
    hp = jax.lax.Precision.HIGHEST
    out = jnp.dot(adj, jnp.dot(x, weight, precision=hp), precision=hp)
    if bias is not None:
        out = out + bias
    return out


if __name__ == "__main__":
    key = jax.random.PRNGKey(0)
    keys = jax.random.split(key, 8)

    # ---- case 1: in_f < out_f -> fused path (W applied in the epilogue);
    #      2 row blocks x 2 K blocks, resident features, padded lane widths.
    N, in_f, out_f = 512, 16, 32
    stdv = 1.0 / math.sqrt(out_f)
    weight = jax.random.uniform(keys[0], (in_f, out_f), jnp.float32, -stdv, stdv)
    bias = jax.random.uniform(keys[1], (out_f,), jnp.float32, -stdv, stdv)
    x = jax.random.normal(keys[2], (N, in_f), jnp.float32)
    adj_raw = jax.random.uniform(keys[3], (N, N), jnp.float32)
    adj = adj_raw / jnp.sum(adj_raw, axis=1, keepdims=True)

    out = jax.block_until_ready(
        graph_convolution(x, adj, weight, bias, row_tile=512, k_tile=256))
    assert out.shape == (N, out_f) and out.dtype == x.dtype

    ref_m = _reference_matched(x, adj, weight, bias)
    assert jnp.allclose(out, ref_m, atol=3e-3, rtol=3e-3), \
        "fused path: mismatch vs matched-precision reference"
    assert jnp.allclose(out, _reference_f32(x, adj, weight, bias),
                        atol=1e-2, rtol=1e-2), \
        "fused path: mismatch vs f32 reference"

    # ---- case 2: out_f <= in_f -> precomputed-support path; ragged N
    #      (partial row block + masked ragged K tail across 2 K blocks).
    N2, in_f2, out_f2 = 300, 64, 16
    stdv2 = 1.0 / math.sqrt(out_f2)
    weight2 = jax.random.uniform(keys[4], (in_f2, out_f2), jnp.float32, -stdv2, stdv2)
    bias2 = jax.random.uniform(keys[5], (out_f2,), jnp.float32, -stdv2, stdv2)
    x2 = jax.random.normal(keys[6], (N2, in_f2), jnp.float32)
    adj2_raw = jax.random.uniform(keys[7], (N2, N2), jnp.float32)
    adj2 = adj2_raw / jnp.sum(adj2_raw, axis=1, keepdims=True)

    out2 = jax.block_until_ready(
        graph_convolution(x2, adj2, weight2, bias2, row_tile=512, k_tile=256))
    assert out2.shape == (N2, out_f2) and out2.dtype == x2.dtype

    ref2_m = _reference_matched(x2, adj2, weight2, bias2)
    assert jnp.allclose(out2, ref2_m, atol=3e-3, rtol=3e-3), \
        "support path: mismatch vs matched-precision reference"
    assert jnp.allclose(out2, _reference_f32(x2, adj2, weight2, bias2),
                        atol=1e-2, rtol=1e-2), \
        "support path: mismatch vs f32 reference"

    # ---- case 3: bias=None branch (same data as case 2) ----------------------
    out3 = jax.block_until_ready(
        graph_convolution(x2, adj2, weight2, None, row_tile=512, k_tile=256))
    assert jnp.allclose(out3, _reference_matched(x2, adj2, weight2, None),
                        atol=3e-3, rtol=3e-3), \
        "no-bias: mismatch vs matched-precision reference"

    print("KERNEL_OK")
</pallas_src>

<mosaic_0001>
module attributes {stable_mosaic.version = 11 : i64} {
  func.func @_gcn_kernel_fused(%arg0: i32, %arg1: i32, %arg2: memref<256x256xf32, #tpu.memory_space<vmem>>, %arg3: memref<512x128xbf16, #tpu.memory_space<vmem>>, %arg4: memref<128x128xbf16, #tpu.memory_space<vmem>>, %arg5: memref<1x128xf32, #tpu.memory_space<vmem>>, %arg6: memref<256x128xf32, #tpu.memory_space<vmem>>, %arg7: memref<256x128xf32, #tpu.memory_space<vmem>>) attributes {dimension_semantics = [#tpu.dimension_semantics<parallel>, #tpu.dimension_semantics<arbitrary>], iteration_bounds = array<i64: 2, 2>, scalar_prefetch = 0 : i64, scratch_operands = 1 : i64, tpu.core_type = #tpu.core_type<tc>, window_params = [{transform_indices = @transform_0, window_bounds = array<i64: 256, 256>}, {pipeline_mode = #tpu.pipeline_mode<synchronous>, transform_indices = @transform_1, window_bounds = array<i64: 512, 128>}, {pipeline_mode = #tpu.pipeline_mode<synchronous>, transform_indices = @transform_2, window_bounds = array<i64: 128, 128>}, {pipeline_mode = #tpu.pipeline_mode<synchronous>, transform_indices = @transform_3, window_bounds = array<i64: 1, 128>}, {transform_indices = @transform_4, window_bounds = array<i64: 256, 128>}]} {
    %c0_i32 = arith.constant 0 : i32
    %0 = arith.cmpi eq, %arg1, %c0_i32 : i32
    %1 = arith.extui %0 : i1 to i32
    %c0_i32_0 = arith.constant 0 : i32
    %2 = arith.cmpi ne, %1, %c0_i32_0 : i32
    scf.if %2 {
      %cst_8 = arith.constant 0.000000e+00 : f32
      %16 = vector.broadcast %cst_8 : f32 to vector<256x128xf32>
      %c0_9 = arith.constant 0 : index
      %c0_10 = arith.constant 0 : index
      %17 = vector.load %arg7[%c0_9, %c0_10] : memref<256x128xf32, #tpu.memory_space<vmem>>, vector<256x128xf32>
      tpu.vector_store %arg7[%c0_9, %c0_10], %16 {strides = array<i32>} : memref<256x128xf32, #tpu.memory_space<vmem>>, vector<256x128xf32>,
    } else {
    }
    %c0 = arith.constant 0 : index
    %c0_1 = arith.constant 0 : index
    %3 = vector.load %arg2[%c0, %c0_1] : memref<256x256xf32, #tpu.memory_space<vmem>>, vector<256x256xf32>
    %4 = arith.truncf %3 : vector<256x256xf32> to vector<256x256xbf16>
    %c256_i32 = arith.constant 256 : i32
    %5 = arith.muli %arg1, %c256_i32 : i32
    %6 = tpu.assume_multiple %5, 256 : i32
    %7 = arith.index_cast %6 : i32 to index
    %c0_2 = arith.constant 0 : index
    %8 = vector.load %arg3[%7, %c0_2] : memref<512x128xbf16, #tpu.memory_space<vmem>>, vector<256x128xbf16>
    %c0_3 = arith.constant 0 : index
    %c0_4 = arith.constant 0 : index
    %9 = vector.load %arg7[%c0_3, %c0_4] : memref<256x128xf32, #tpu.memory_space<vmem>>, vector<256x128xf32>
    %cst = arith.constant dense<0.000000e+00> : vector<256x128xf32>
    %10 = tpu.matmul %4, %8, %cst {dimension_numbers = #tpu.dot_dimension_numbers<[1], [0], [0], [1], [0, 0, 1, 1], [], []>} : vector<256x256xbf16>, vector<256x128xbf16>, vector<256x128xf32> -> vector<256x128xf32>
    %11 = arith.addf %9, %10 : vector<256x128xf32>
    %c0_5 = arith.constant 0 : index
    %c0_6 = arith.constant 0 : index
    %12 = vector.load %arg7[%c0_5, %c0_6] : memref<256x128xf32, #tpu.memory_space<vmem>>, vector<256x128xf32>
    tpu.vector_store %arg7[%c0_5, %c0_6], %11 {strides = array<i32>} : memref<256x128xf32, #tpu.memory_space<vmem>>, vector<256x128xf32>,
    %c1_i32 = arith.constant 1 : i32
    %13 = arith.cmpi eq, %arg1, %c1_i32 : i32
    %14 = arith.extui %13 : i1 to i32
    %c0_i32_7 = arith.constant 0 : i32
    %15 = arith.cmpi ne, %14, %c0_i32_7 : i32
    scf.if %15 {
      %c0_8 = arith.constant 0 : index
      %c0_9 = arith.constant 0 : index
      %16 = vector.load %arg7[%c0_8, %c0_9] : memref<256x128xf32, #tpu.memory_space<vmem>>, vector<256x128xf32>
      %17 = arith.truncf %16 : vector<256x128xf32> to vector<256x128xbf16>
      %c0_10 = arith.constant 0 : index
      %c0_11 = arith.constant 0 : index
      %18 = vector.load %arg4[%c0_10, %c0_11] : memref<128x128xbf16, #tpu.memory_space<vmem>>, vector<128x128xbf16>
      %cst_12 = arith.constant dense<0.000000e+00> : vector<256x128xf32>
      %19 = tpu.matmul %17, %18, %cst_12 {dimension_numbers = #tpu.dot_dimension_numbers<[1], [0], [0], [1], [0, 0, 1, 1], [], []>} : vector<256x128xbf16>, vector<128x128xbf16>, vector<256x128xf32> -> vector<256x128xf32>
      %c0_13 = arith.constant 0 : index
      %c0_14 = arith.constant 0 : index
      %20 = vector.load %arg5[%c0_13, %c0_14] : memref<1x128xf32, #tpu.memory_space<vmem>>, vector<1x128xf32>
      %21 = vector.broadcast %20 : vector<1x128xf32> to vector<256x128xf32>
      %22 = arith.addf %19, %21 : vector<256x128xf32>
      %c0_15 = arith.constant 0 : index
      %c0_16 = arith.constant 0 : index
      %23 = vector.load %arg6[%c0_15, %c0_16] : memref<256x128xf32, #tpu.memory_space<vmem>>, vector<256x128xf32>
      tpu.vector_store %arg6[%c0_15, %c0_16], %22 {strides = array<i32>} : memref<256x128xf32, #tpu.memory_space<vmem>>, vector<256x128xf32>,
    } else {
    }
    return
  }
  func.func @transform_0(%arg0: i32, %arg1: i32) -> (i32, i32) {
    %c0_i32 = arith.constant 0 : i32
    return %arg0, %arg1 : i32, i32
  }
  func.func @transform_1(%arg0: i32, %arg1: i32) -> (i32, i32) {
    %c0_i32 = arith.constant 0 : i32
    %c0_i32_0 = arith.constant 0 : i32
    %c0_i32_1 = arith.constant 0 : i32
    return %c0_i32, %c0_i32_0 : i32, i32
  }
  func.func @transform_2(%arg0: i32, %arg1: i32) -> (i32, i32) {
    %c0_i32 = arith.constant 0 : i32
    %c0_i32_0 = arith.constant 0 : i32
    %c0_i32_1 = arith.constant 0 : i32
    return %c0_i32, %c0_i32_0 : i32, i32
  }
  func.func @transform_3(%arg0: i32, %arg1: i32) -> (i32, i32) {
    %c0_i32 = arith.constant 0 : i32
    %c0_i32_0 = arith.constant 0 : i32
    %c0_i32_1 = arith.constant 0 : i32
    return %c0_i32, %c0_i32_0 : i32, i32
  }
  func.func @transform_4(%arg0: i32, %arg1: i32) -> (i32, i32) {
    %c0_i32 = arith.constant 0 : i32
    %c0_i32_0 = arith.constant 0 : i32
    return %arg0, %c0_i32 : i32, i32
  }
}

</mosaic_0001>

<bundles_post_ra>
// kernel: tpu_custom_call.1
= control target key start
LH: loop header
LB: loop body
LE: loop exit
PB: predicated region body
PF: predicated region fallthrough
CT: control target
= control target key end

     0   :  { %s2367_s0 = inlined_call_operand.hbm [shape: f32[512,512], index: 0, kind: input, shape index: {}]   ;;  %s2368_s1 = inlined_call_operand.hbm [shape: bf16[512,128], index: 1, kind: input, shape index: {}]   ;;  %s2369_s2 = inlined_call_operand.hbm [shape: bf16[128,128], index: 2, kind: input, shape index: {}]   ;;  %s2370_s3 = inlined_call_operand.vmem [shape: f32[1,128], index: 3, kind: input, shape index: {}]   ;;  %s2371_s4 = inlined_call_operand.hbm [shape: f32[512,128], index: 4, kind: output, shape index: {}]  }
   0x1   :  { %2383 = sst [smem:[#allocation18_spill]] %s2368_s1 }
   0x2   :  { %2384 = sst [smem:[#allocation19_spill]] %s2369_s2 }
   0x3   :  { %2385 = sst [smem:[#allocation20_spill]] %s2371_s4 }
   0x4   :  { %9 = vsyncpa [#allocation4], 0 }
   0x5   :  { %11 = vsyncpa [#allocation4 + $0x1], 0 }
   0x6   :  { %12 = vsyncpa [#allocation7], 0 }
   0x7   :  { %13 = vsyncpa [#allocation5], 0 }
   0x8   :  { %15 = vsyncpa [#allocation5 + $0x1], 0  ;;  %s1900_s15 = smov 0   ;;  %s1902_s16 = smov 0  }
   0x9   :  { %s1904_s17 = smov 0   ;;  %s1906_s18 = smov 0  }
   0xa   :  { %s1908_s19 = smov 0   ;;  %s1910_s20 = smov 0  }
   0xb   :  { %s1912_s21 = smov 0   ;;  %s1914_s22 = smov 0  }
   0xc   :  { %s1916_s23 = smov 0   ;;  %s1918_s24 = smov 0  }
   0xd   :  { %s1920_s25 = smov 0  }
   0xe LB: > { %2386 = sst [smem:[#allocation13_spill]] %s1821_s15  ;;  %s1226_s26 = sadd.s32 4294967295, %s1861_s25   ;;  %s1861_s25 = sphi %s1920_s25, %s21_s25   ;;  %s1857_s24 = sphi %s1918_s24, %s2421_s24   ;;  %s1853_s23 = sphi %s1916_s23, %s2420_s23   ;;  %s1849_s22 = sphi %s1914_s22, %s2419_s22   ;;  %s1845_s21 = sphi %s1912_s21, %s2411_s21   ;;  %s1841_s20 = sphi %s1910_s20, %s2418_s20   ;;  %s1837_s19 = sphi %s1908_s19, %s2417_s19   ;;  %s1833_s18 = sphi %s1906_s18, %s2416_s18   ;;  %s1829_s17 = sphi %s1904_s17, %s2415_s17   ;;  %s1825_s16 = sphi %s1902_s16, %s2414_s16   ;;  %s1821_s15 = sphi %s1900_s15, %s2413_s15  }
   0xf   : > { %2387 = sst [smem:[#allocation14_spill]] %s1853_s23  ;;  %s1227_s27 = sadd.s32 4294967294, %s1861_s25  }
  0x10   : > { %2388 = sst [smem:[#allocation15_spill]] %s1861_s25  ;;  %p49_p0 = scmp.ne.s32.totalorder %s1841_s20, %s1837_s19 }
  0x11   : > { %p50_p1 = scmp.eq.s32.totalorder %s1861_s25, 0  ;;  %p55_p2 = scmp.ne.s32.totalorder %s1837_s19, %s1833_s18 }
  0x12   : > { %p1960_p3 = scmp.eq.s32.totalorder %s1226_s26, 0  ;;  %p141_p5 = scmp.ne.s32.totalorder %s1829_s17, %s1825_s16 }
  0x13   : > { %p1965_p4 = por %p50_p1, %p49_p0  ;;  %p142_p7 = scmp.eq.s32.totalorder %s1226_s26, 3 }
  0x14   : > { %s2389_s29 = scalar_select %p1960_p3, 1, 0 }
  0x15   : > { %p1973_p6 = por %p1960_p3, %p55_p2  ;;  %p147_p8 = scmp.ne.s32.totalorder %s1825_s16, %s1821_s15 }
  0x16   : > { %p148_p9 = scmp.eq.s32.totalorder %s1227_s27, 3  ;;  %p1979_p10 = por %p142_p7, %p141_p5 }
  0x17   : > { %s2391_s6 = scalar_select %p1973_p6, 1, 0 }
  0x18   : > { %s2392_s7 = scalar_select %p1979_p10, 1, 0 }
  0x19   : > { %p1228_p11 = scmp.ge.s32.totalorder %s1861_s25, 1  ;;  %p1984_p12 = por %p148_p9, %p147_p8 }
  0x1a   : > { %p155_p13 = scmp.lt.s32.totalorder %s1861_s25, 5  ;;  %s1863_s10 = smov [#allocation6]  }
  0x1b   : > { %s2393_s8 = scalar_select %p1984_p12, 1, 0 }
  0x1c   : > { %p1989_p0 = pnand %p1228_p11, %p155_p13  ;;  %s167_s11 = sshll.u32 %s1863_s10, 4  ;;  %s1993_s11 = int_to_ptr.vmem [resolvable:$true] %s167_s11 }
  0x1d   : > { %2394 = sst [smem:[#allocation16_spill]] %s2393_s8  ;;  %p1523_p2 = scmp.lt.s32.totalorder %s1861_s25, 4 }
  0x1e   : > { %p1506_p1 = pneg %p1989_p0  ;;  %s1864_s14 = smov [#allocation8]  }
  0x1f   : > { %p2006_p7 = pnand %p1523_p2, %p1965_p4  ;;  %s180_s18 = sshll.u32 %s1864_s14, 4  ;;  %s2010_s18 = int_to_ptr.vmem [resolvable:$true] %s180_s18 }
  0x20   : > { %p2000_p5 = pnand %p1506_p1, %p1960_p3  ;;  %s2398_s1 = sld [smem:[#allocation18_spill]] }
  0x22   : > { %p1651_p9 = pneg %p2000_p5 }
  0x26   : > { %s1649_s10 = scalar_lea.hbm %s2398_s1, 4096 }
  0x27   : > { %p1650_p8 = scmp.ne.s32.totalorder %s2398_s1, %s1649_s10  ;;  %p1656_p13 = scmp.lt.u32.totalorder %s1649_s10, %s2398_s1 }
  0x29   : > { %p1652_p4 = pnand %p1651_p9, %p1650_p8 }
  0x2b   : > { %p1653_p11 = pneg %p1652_p4 }
  0x2d   : > { %p1658_p1 = pnand %p1656_p13, %p1653_p11 }
  0x2f   : > { %1661 = shalt.err (!%p1658_p1)
}
  0x30   : > { %s1662_s14 = scalar_lea.vmem %s1993_s11, 4096  ;;  %p1670_p3 = scmp.lt.s32.totalorder %s1993_s11, %s1993_s11 }
  0x31   : > { %p1663_p2 = scmp.ne.s32.totalorder %s1993_s11, %s1662_s14  ;;  %p1671_p8 = scmp.lt.s32.totalorder %s1662_s14, %s1662_s14 }
  0x33   : > { %p1665_p12 = pnand %p1663_p2, %p1651_p9  ;;  %p1672_p4 = por %p1671_p8, %p1670_p3 }
  0x35   : > { %p1666_p10 = pneg %p1665_p12 }
  0x37   : > { %p1673_p6 = pnand %p1672_p4, %p1666_p10 }
  0x39   : > { %1676 = shalt.err (!%p1673_p6)
}
  0x3a   : > { %s1865_s28 = smov 64   ;;  %s1866_s30 = smov 4  }
  0x3b   : > { %1509 = dma.hbm_to_vmem [thread:$0]  (!%p2000_p5), %s2398_s1, 4096, %s1993_s11, [#allocation7], %s1865_s28, %s1865_s28, %s1866_s30  }
  0x3c   : > { %s2399_s2 = sld [smem:[#allocation19_spill]] }
  0x42   : > { %s1677_s5 = scalar_lea.hbm %s2399_s2, 1024 }
  0x43   : > { %p1678_p3 = scmp.ne.s32.totalorder %s2399_s2, %s1677_s5  ;;  %p1684_p12 = scmp.lt.u32.totalorder %s1677_s5, %s2399_s2 }
  0x45   : > { %p1680_p6 = pnand %p1678_p3, %p1651_p9 }
  0x47   : > { %p1681_p10 = pneg %p1680_p6 }
  0x49   : > { %p1686_p11 = pnand %p1684_p12, %p1681_p10 }
  0x4b   : > { %1689 = shalt.err (!%p1686_p11)
}
  0x4c   : > { %s1690_s11 = scalar_lea.vmem %s2010_s18, 1024  ;;  %p1698_p8 = scmp.lt.s32.totalorder %s2010_s18, %s2010_s18 }
  0x4d   : > { %p1691_p13 = scmp.ne.s32.totalorder %s2010_s18, %s1690_s11  ;;  %p1699_p4 = scmp.lt.s32.totalorder %s1690_s11, %s1690_s11 }
  0x4f   : > { %p1693_p1 = pnand %p1691_p13, %p1651_p9  ;;  %p1700_p3 = por %p1699_p4, %p1698_p8 }
  0x51   : > { %p1694_p2 = pneg %p1693_p1 }
  0x53   : > { %p1701_p6 = pnand %p1700_p3, %p1694_p2 }
  0x55   : > { %1704 = shalt.err (!%p1701_p6)
}
  0x56   : > { %1512 = dma.hbm_to_vmem [thread:$0]  (!%p2000_p5), %s2399_s2, 1024, %s2010_s18, [#allocation7], %s1865_s28, %s1865_s28, %s1866_s30  }
  0x57   : > { %s30_s25 = sadd.s32 1, %s1853_s23  ;;  %s33_s8 = sadd.s32 1, %s1857_s24 }
  0x58   : > { %p31_p9 = scmp.ge.s32.totalorder %s30_s25, 2  ;;  %s197_s26 = sand.u32 1, %s1841_s20  }
  0x59   : > { %s1234_s27 = sshll.u32 %s1853_s23, 1  ;;  %s1232_s10 = sshll.u32 %s197_s26, 9 }
  0x5a   : > { %s2423_s25 = smov (%p31_p9, %s30_s25), 0  ;;  %s2425_s8 = smov (!%p31_p9, %s33_s8), %s1857_s24 }
  0x5b   : > { %2400 = sst [smem:[#allocation17_spill]] %s2423_s25  ;;  %s38_s12 = ssub.s32 %s1853_s23, %s2423_s25 }
  0x5c   : > { %p35_p10 = scmp.ge.s32.totalorder %s2425_s8, 2  ;;  %s1276_s5 = sshll.u32 %s1857_s24, 7 }
  0x5d   : > { %s208_s18 = sadd.s32 %s1276_s5, %s1234_s27  ;;  %s201_s28 = scalar_lea.vmem [#allocation3], %s1232_s10 }
  0x5e   : > { %s2427_s8 = smov (%p35_p10, %s2425_s8), 0  ;;  %s211_s30 = sshll.u32 %s201_s28, 4  ;;  %s2093_s30 = int_to_ptr.vmem [resolvable:$true] %s211_s30 }
  0x5f   : > { %s37_s14 = ssub.s32 %s1857_s24, %s2427_s8  ;;  %s1236_s11 = sshll.u32 %s208_s18, 7 }
  0x60   : > { %s39_s4 = sor.u32 %s38_s12, %s37_s14  ;;  %p129_p5 = scmp.eq.s32.totalorder %s37_s14, 0 }
  0x61   : > { %p40_p12 = scmp.eq.s32.totalorder %s39_s4, 0  ;;  %s2081_s2 = scalar_lea.hbm %s2367_s0, %s1236_s11 }
  0x62   : > { %s2401_s25 = sadd.s32 1, %s1829_s17  ;;  %s2402_s27 = sadd.s32 1, %s1841_s20 }
  0x63   : > { %s2086_s23 = scalar_select %p129_p5, %s1829_s17, %s2401_s25  }
  0x64   : > { %s2091_s10 = scalar_select %p40_p12, %s1841_s20, %s2402_s27  }
  0x65   : > { %s2095_s12 = scalar_lea.sflag [#allocation4], %s197_s26  ;;  %s1705_s5 = scalar_lea.hbm %s2081_s2, 8192 }
  0x66   : > { %p1706_p11 = scmp.ne.s32.totalorder %s2081_s2, %s1705_s5  ;;  %p1707_p13 = pneg %p2006_p7 }
  0x67   : > { %s1710_s25 = scalar_lea.hbm %s2367_s0, 32768  ;;  %p1711_p8 = scmp.lt.u32.totalorder %s2081_s2, %s2367_s0 }
  0x68   : > { %p1708_p1 = pnand %p1707_p13, %p1706_p11  ;;  %p1712_p4 = scmp.lt.u32.totalorder %s1710_s25, %s1705_s5 }
  0x69   : > { %p1714_p6 = scmp.lt.u32.totalorder %s1705_s5, %s2081_s2 }
  0x6a   : > { %p1709_p2 = pneg %p1708_p1  ;;  %p1713_p3 = por %p1712_p4, %p1711_p8 }
  0x6c   : > { %p1715_p9 = por %p1714_p6, %p1713_p3 }
  0x6e   : > { %p1716_p10 = pnand %p1715_p9, %p1709_p2 }
  0x70   : > { %1719 = shalt.err (!%p1716_p10)
}
  0x71   : > { %s1720_s26 = scalar_lea.vmem %s2093_s30, 8192  ;;  %s1867_s11 = smov [#allocation3]  }
  0x72   : > { %p1721_p5 = scmp.ne.s32.totalorder %s2093_s30, %s1720_s26  ;;  %s1725_s4 = sshll.u32 %s1867_s11, 4  ;;  %s1726_s4 = int_to_ptr.vmem [resolvable:$false] %s1725_s4 }
  0x73   : > { %s1727_s15 = scalar_lea.vmem %s1726_s4, 16384  ;;  %p1728_p1 = scmp.lt.s32.totalorder %s2093_s30, %s1726_s4 }
  0x74   : > { %p1723_p12 = pnand %p1721_p5, %p1707_p13  ;;  %p1729_p8 = scmp.lt.s32.totalorder %s1727_s15, %s1720_s26 }
  0x76   : > { %p1724_p11 = pneg %p1723_p12  ;;  %p1730_p4 = por %p1729_p8, %p1728_p1 }
  0x78   : > { %p1731_p3 = pnand %p1730_p4, %p1724_p11 }
  0x7a   : > { %1734 = shalt.err (!%p1731_p3)
}
  0x7b   : > { %s1868_s27 = smov 512   ;;  %s1869_s5 = smov 256  }
  0x7c   : > { %s1870_s1 = smov 16   ;;  %223 = sbr.rel (%p1989_p0) target bundleno = 742 (0x2e6), region = 36 }
  0x7d   : > { %1516 = dma.hbm_to_vmem [thread:$0]  (!%p2006_p7), %s2081_s2, 8192, %s2093_s30, %s2095_s12, %s1868_s27, %s1869_s5, %s1870_s1  }
  0x7e   : > { %s225_s18 = sand.u32 (!%p1989_p0), 1, %s1837_s19   ;;  %p2403_p13 = scmp.ne.s32.totalorder (!%p1989_p0), %s2391_s6, 0 }
  0x7f   : > { %s1238_s25 = sshll.u32 (!%p1989_p0), %s225_s18, 9  ;;  %s226_s28 = scalar_lea.sflag (!%p1989_p0), [#allocation4], %s225_s18 }
  0x80   : > { %s2126_s14 = scalar_lea.vmem (!%p1989_p0), [#allocation3], %s1238_s25 }
  0x83   : > { %1808 = dma.done.wait (%p2403_p13), %s226_s28, 8192  }
  0x84   : > { %1810 = vsyncadd (%p2403_p13), %s226_s28, 4294959104  ;;  %p2404_p2 = scmp.ne.s32.totalorder %s2389_s29, 0 }
  0x86   : > { %1812 = dma.done.wait (%p2404_p2), [#allocation7], 5120  }
  0x87   : > { %1814 = vsyncadd (%p2404_p2), [#allocation7], 4294962176  ;;  %s259_s2 = sand.u32 1, %s1825_s16   ;;  %p1242_p0 = scmp.ne.s32.totalorder %s1845_s21, 0 }
  0x88   : > { %s1241_s9 = sshll.u32 %s259_s2, 8  ;;  %v1871_v0 = vmov (!%p1242_p0), 0.0  }
  0x89   : > { %s2139_s13 = scalar_lea.vmem [#allocation9], %s1241_s9  ;;  %269 = sbr.rel (%p1242_p0) target bundleno = 153 (0x99), region = 52  ;;  %270 = vst [vmem:[#allocation2] sm:$0xff] (!%p1242_p0), %v1871_v0  ;;  %271 = vst [vmem:[#allocation2 + $0x8] sm:$0xff] (!%p1242_p0), %v1871_v0 }
  0x8a   : > { %272 = vst [vmem:[#allocation2 + $0x10] sm:$0xff] (!%p1242_p0), %v1871_v0  ;;  %273 = vst [vmem:[#allocation2 + $0x18] sm:$0xff] (!%p1242_p0), %v1871_v0 }
  0x8b   : > { %274 = vst [vmem:[#allocation2 + $0x20] sm:$0xff] (!%p1242_p0), %v1871_v0  ;;  %275 = vst [vmem:[#allocation2 + $0x28] sm:$0xff] (!%p1242_p0), %v1871_v0 }
  0x8c   : > { %276 = vst [vmem:[#allocation2 + $0x30] sm:$0xff] (!%p1242_p0), %v1871_v0  ;;  %277 = vst [vmem:[#allocation2 + $0x38] sm:$0xff] (!%p1242_p0), %v1871_v0 }
  0x8d   : > { %278 = vst [vmem:[#allocation2 + $0x40] sm:$0xff] (!%p1242_p0), %v1871_v0  ;;  %279 = vst [vmem:[#allocation2 + $0x48] sm:$0xff] (!%p1242_p0), %v1871_v0 }
  0x8e   : > { %280 = vst [vmem:[#allocation2 + $0x50] sm:$0xff] (!%p1242_p0), %v1871_v0  ;;  %281 = vst [vmem:[#allocation2 + $0x58] sm:$0xff] (!%p1242_p0), %v1871_v0 }
  0x8f   : > { %282 = vst [vmem:[#allocation2 + $0x60] sm:$0xff] (!%p1242_p0), %v1871_v0  ;;  %283 = vst [vmem:[#allocation2 + $0x68] sm:$0xff] (!%p1242_p0), %v1871_v0 }
  0x90   : > { %284 = vst [vmem:[#allocation2 + $0x70] sm:$0xff] %v1871_v0  ;;  %285 = vst [vmem:[#allocation2 + $0x78] sm:$0xff] %v1871_v0 }
  0x91   : > { %286 = vst [vmem:[#allocation2 + $0x80] sm:$0xff] %v1871_v0  ;;  %287 = vst [vmem:[#allocation2 + $0x88] sm:$0xff] %v1871_v0 }
  0x92   : > { %288 = vst [vmem:[#allocation2 + $0x90] sm:$0xff] %v1871_v0  ;;  %289 = vst [vmem:[#allocation2 + $0x98] sm:$0xff] %v1871_v0 }
  0x93   : > { %290 = vst [vmem:[#allocation2 + $0xa0] sm:$0xff] %v1871_v0  ;;  %291 = vst [vmem:[#allocation2 + $0xa8] sm:$0xff] %v1871_v0 }
  0x94   : > { %292 = vst [vmem:[#allocation2 + $0xb0] sm:$0xff] %v1871_v0  ;;  %293 = vst [vmem:[#allocation2 + $0xb8] sm:$0xff] %v1871_v0 }
  0x95   : > { %294 = vst [vmem:[#allocation2 + $0xc0] sm:$0xff] %v1871_v0  ;;  %295 = vst [vmem:[#allocation2 + $0xc8] sm:$0xff] %v1871_v0 }
  0x96   : > { %296 = vst [vmem:[#allocation2 + $0xd0] sm:$0xff] %v1871_v0  ;;  %297 = vst [vmem:[#allocation2 + $0xd8] sm:$0xff] %v1871_v0 }
  0x97   : > { %298 = vst [vmem:[#allocation2 + $0xe0] sm:$0xff] %v1871_v0  ;;  %299 = vst [vmem:[#allocation2 + $0xe8] sm:$0xff] %v1871_v0 }
  0x98   : > { %300 = vst [vmem:[#allocation2 + $0xf0] sm:$0xff] %v1871_v0  ;;  %301 = vst [vmem:[#allocation2 + $0xf8] sm:$0xff] %v1871_v0 }
  0x99 PF: > { %s1243_s29 = sshll.u32 %s1845_s21, 8  ;;  %v303_v1 = vld [vmem:[%s2126_s14 + $0x8] sm:$0xff]  ;;  %v305_v2 = vld [vmem:[%s2126_s14 + $0x18] sm:$0xff]  ;;  %v302_v22 = vld [vmem:[%s2126_s14] sm:$0xff]  ;;  %p1261_p7 = scmp.ne.s32.totalorder %s1845_s21, 1 }
  0x9a   : > { %v335_v3 = vld [vmem:[%s2126_s14 + $0x108] sm:$0xff]  ;;  %s399_s6 = sshra.s32 %s1243_s29, 3  ;;  %v367_v4 = vpack.c.bf16 %v305_v2, %v303_v1  ;;  %v337_v5 = vld [vmem:[%s2126_s14 + $0x118] sm:$0xff]  ;;  %v304_v23 = vld [vmem:[%s2126_s14 + $0x10] sm:$0xff] }
  0x9b   : > { %s1244_s30 = sshll.u32 %s399_s6, 2  ;;  %v383_v6 = vpack.c.bf16 %v337_v5, %v335_v3  ;;  %v334_v24 = vld [vmem:[%s2126_s14 + $0x100] sm:$0xff]  ;;  %v336_v26 = vld [vmem:[%s2126_s14 + $0x110] sm:$0xff]  ;;  %v307_v27 = vld [vmem:[%s2126_s14 + $0x28] sm:$0xff]  ;;  %v366_v31 = vpack.c.bf16 %v304_v23, %v302_v22 }
  0x9c   : > { %595 = vmatprep.mubr.bf16.mxu0 %v367_v4  ;;  %s2147_s12 = scalar_lea.vmem [#allocation6], %s1244_s30  ;;  %v309_v28 = vld [vmem:[%s2126_s14 + $0x38] sm:$0xff]  ;;  %v339_v29 = vld [vmem:[%s2126_s14 + $0x128] sm:$0xff]  ;;  %v382_v32 = vpack.c.bf16 %v336_v26, %v334_v24  ;;  %v306_v35 = vld [vmem:[%s2126_s14 + $0x20] sm:$0xff] }
  0x9d   : > { %v1625_v7 = vld [vmem:[%s2147_s12 + $0x40] sm:$0xff]   ;;  %659 = vmatprep.mubr.bf16.mxu1 %v383_v6  ;;  %v1627_v9 = vld [vmem:[%s2147_s12 + $0x48] sm:$0xff]   ;;  %v1629_v11 = vld [vmem:[%s2147_s12 + $0x50] sm:$0xff]   ;;  %v369_v33 = vpack.c.bf16 %v309_v28, %v307_v27 }
  0x9e   : > { %v1626_v8 = vld [vmem:[%s2147_s12] sm:$0xff]   ;;  %1278 = vmatprep.subr.bf16.mxu0 %v1625_v7  ;;  %1462 = vmatprep.subr.bf16.mxu1 %v1625_v7  ;;  %v1628_v10 = vld [vmem:[%s2147_s12 + $0x8] sm:$0xff]   ;;  %v1630_v12 = vld [vmem:[%s2147_s12 + $0x10] sm:$0xff]  }
  0x9f   : > { %1279 = vmatpush3.bf16.msra.mxu0 %v1626_v8  ;;  %1470 = vmatpush3.bf16.msra.mxu1 %v1626_v8  ;;  %v1631_v13 = vld [vmem:[%s2147_s12 + $0x58] sm:$0xff]   ;;  %v1633_v15 = vld [vmem:[%s2147_s12 + $0x60] sm:$0xff]   ;;  %v1635_v17 = vld [vmem:[%s2147_s12 + $0x68] sm:$0xff]  }
  0xa0   : > { %1280 = vmatprep.subr.bf16.mxu0 %v1627_v9  ;;  %1463 = vmatprep.subr.bf16.mxu1 %v1627_v9  ;;  %v1632_v14 = vld [vmem:[%s2147_s12 + $0x18] sm:$0xff]   ;;  %v1634_v16 = vld [vmem:[%s2147_s12 + $0x20] sm:$0xff]   ;;  %v1636_v18 = vld [vmem:[%s2147_s12 + $0x28] sm:$0xff]  }
  0xa1   : > { %v1637_v19 = vld [vmem:[%s2147_s12 + $0x70] sm:$0xff]   ;;  %v1639_v21 = vld [vmem:[%s2147_s12 + $0x78] sm:$0xff]   ;;  %v338_v37 = vld [vmem:[%s2126_s14 + $0x120] sm:$0xff] }
  0xa2   : > { %v1638_v20 = vld [vmem:[%s2147_s12 + $0x30] sm:$0xff]   ;;  %v1640_v25 = vld [vmem:[%s2147_s12 + $0x38] sm:$0xff]   ;;  %v311_v39 = vld [vmem:[%s2126_s14 + $0x48] sm:$0xff] }
  0xa3   : > { %1281 = vmatpush3.bf16.msra.mxu0 %v1628_v10  ;;  %1471 = vmatpush3.bf16.msra.mxu1 %v1628_v10  ;;  %v341_v30 = vld [vmem:[%s2126_s14 + $0x138] sm:$0xff]  ;;  %v308_v36 = vld [vmem:[%s2126_s14 + $0x30] sm:$0xff]  ;;  %v343_v41 = vld [vmem:[%s2126_s14 + $0x148] sm:$0xff] }
  0xa4   : > { %1282 = vmatprep.subr.bf16.mxu0 %v1629_v11  ;;  %1464 = vmatprep.subr.bf16.mxu1 %v1629_v11  ;;  %v385_v34 = vpack.c.bf16 %v341_v30, %v339_v29  ;;  %v340_v38 = vld [vmem:[%s2126_s14 + $0x130] sm:$0xff]  ;;  %v313_v40 = vld [vmem:[%s2126_s14 + $0x58] sm:$0xff]  ;;  %v368_v43 = vpack.c.bf16 %v308_v36, %v306_v35  ;;  %v310_v47 = vld [vmem:[%s2126_s14 + $0x40] sm:$0xff] }
  0xa5   : > { %v345_v42 = vld [vmem:[%s2126_s14 + $0x158] sm:$0xff]  ;;  %v384_v44 = vpack.c.bf16 %v340_v38, %v338_v37  ;;  %v371_v45 = vpack.c.bf16 %v313_v40, %v311_v39  ;;  %v312_v48 = vld [vmem:[%s2126_s14 + $0x50] sm:$0xff]  ;;  %v342_v49 = vld [vmem:[%s2126_s14 + $0x140] sm:$0xff] }
  0xa6   : > { %v387_v46 = vpack.c.bf16 %v345_v42, %v343_v41  ;;  %v344_v50 = vld [vmem:[%s2126_s14 + $0x150] sm:$0xff]  ;;  %v315_v51 = vld [vmem:[%s2126_s14 + $0x68] sm:$0xff]  ;;  %v317_v52 = vld [vmem:[%s2126_s14 + $0x78] sm:$0xff]  ;;  %v370_v55 = vpack.c.bf16 %v312_v48, %v310_v47 }
  0xa7   : > { %1283 = vmatpush3.bf16.msra.mxu0 %v1630_v12  ;;  %1472 = vmatpush3.bf16.msra.mxu1 %v1630_v12  ;;  %v347_v53 = vld [vmem:[%s2126_s14 + $0x168] sm:$0xff]  ;;  %v349_v54 = vld [vmem:[%s2126_s14 + $0x178] sm:$0xff]  ;;  %v386_v56 = vpack.c.bf16 %v344_v50, %v342_v49  ;;  %v373_v57 = vpack.c.bf16 %v317_v52, %v315_v51  ;;  %v314_v59 = vld [vmem:[%s2126_s14 + $0x60] sm:$0xff] }
  0xa8   : > { %1284 = vmatprep.subr.bf16.mxu0 %v1631_v13  ;;  %1465 = vmatprep.subr.bf16.mxu1 %v1631_v13  ;;  %v389_v58 = vpack.c.bf16 %v349_v54, %v347_v53  ;;  %v316_v60 = vld [vmem:[%s2126_s14 + $0x70] sm:$0xff]  ;;  %v346_v61 = vld [vmem:[%s2126_s14 + $0x160] sm:$0xff]  ;;  %v319_v63 = vld [vmem:[%s2126_s14 + $0x88] sm:$0xff] }
  0xa9   : > { %v348_v62 = vld [vmem:[%s2126_s14 + $0x170] sm:$0xff]  ;;  %v321_v0 = vld [vmem:[%s2126_s14 + $0x98] sm:$0xff]  ;;  %v351_v1 = vld [vmem:[%s2126_s14 + $0x188] sm:$0xff]  ;;  %v372_v3 = vpack.c.bf16 %v316_v60, %v314_v59 }
  0xaa   : > { %v353_v2 = vld [vmem:[%s2126_s14 + $0x198] sm:$0xff]  ;;  %v388_v4 = vpack.c.bf16 %v348_v62, %v346_v61  ;;  %v375_v5 = vpack.c.bf16 %v321_v0, %v319_v63  ;;  %v318_v7 = vld [vmem:[%s2126_s14 + $0x80] sm:$0xff]  ;;  %v320_v8 = vld [vmem:[%s2126_s14 + $0x90] sm:$0xff] }
  0xab   : > { %1285 = vmatpush3.bf16.msra.mxu0 %v1632_v14  ;;  %1473 = vmatpush3.bf16.msra.mxu1 %v1632_v14  ;;  %v391_v6 = vpack.c.bf16 %v353_v2, %v351_v1  ;;  %v350_v9 = vld [vmem:[%s2126_s14 + $0x180] sm:$0xff]  ;;  %v352_v10 = vld [vmem:[%s2126_s14 + $0x190] sm:$0xff]  ;;  %v323_v11 = vld [vmem:[%s2126_s14 + $0xa8] sm:$0xff] }
  0xac   : > { %1286 = vmatprep.subr.bf16.mxu0 %v1633_v15  ;;  %1466 = vmatprep.subr.bf16.mxu1 %v1633_v15  ;;  %v325_v12 = vld [vmem:[%s2126_s14 + $0xb8] sm:$0xff]  ;;  %v355_v13 = vld [vmem:[%s2126_s14 + $0x1a8] sm:$0xff]  ;;  %v374_v15 = vpack.c.bf16 %v320_v8, %v318_v7  ;;  %v356_v22 = vld [vmem:[%s2126_s14 + $0x1b0] sm:$0xff] }
  0xad   : > { %v357_v14 = vld [vmem:[%s2126_s14 + $0x1b8] sm:$0xff]  ;;  %v327_v23 = vld [vmem:[%s2126_s14 + $0xc8] sm:$0xff]  ;;  %v435_v51 = vld [vmem:[#allocation2] sm:$0xff] }
  0xae   : > { %v329_v24 = vld [vmem:[%s2126_s14 + $0xd8] sm:$0xff]  ;;  %v331_v35 = vld [vmem:[%s2126_s14 + $0xe8] sm:$0xff]  ;;  %v451_v53 = vld [vmem:[#allocation2 + $0x80] sm:$0xff] }
  0xaf   : > { %1287 = vmatpush3.bf16.msra.mxu0 %v1634_v16  ;;  %1474 = vmatpush3.bf16.msra.mxu1 %v1634_v16  ;;  %v390_v16 = vpack.c.bf16 %v352_v10, %v350_v9  ;;  %v361_v26 = vld [vmem:[%s2126_s14 + $0x1d8] sm:$0xff]  ;;  %v379_v29 = vpack.c.bf16 %v329_v24, %v327_v23  ;;  %v363_v37 = vld [vmem:[%s2126_s14 + $0x1e8] sm:$0xff]  ;;  %v437_v7 = vld [vmem:[#allocation2 + $0x10] sm:$0xff] }
  0xb0   : > { %1288 = vmatprep.subr.bf16.mxu0 %v1635_v17  ;;  %1467 = vmatprep.subr.bf16.mxu1 %v1635_v17  ;;  %v377_v17 = vpack.c.bf16 %v325_v12, %v323_v11  ;;  %v333_v36 = vld [vmem:[%s2126_s14 + $0xf8] sm:$0xff]  ;;  %v436_v59 = vld [vmem:[#allocation2 + $0x8] sm:$0xff]  ;;  %v453_v9 = vld [vmem:[#allocation2 + $0x90] sm:$0xff] }
  0xb1   : > { %v365_v38 = vld [vmem:[%s2126_s14 + $0x1f8] sm:$0xff]  ;;  %v381_v41 = vpack.c.bf16 %v333_v36, %v331_v35  ;;  %v452_v61 = vld [vmem:[#allocation2 + $0x88] sm:$0xff] }
  0xb2   : > { %v397_v42 = vpack.c.bf16 %v365_v38, %v363_v37  ;;  %v440_v35 = vld [vmem:[#allocation2 + $0x28] sm:$0xff] }
  0xb3   : > { %1289 = vmatpush3.bf16.msra.mxu0 %v1636_v18  ;;  %1475 = vmatpush3.bf16.msra.mxu1 %v1636_v18  ;;  %v393_v18 = vpack.c.bf16 %v357_v14, %v355_v13  ;;  %v456_v37 = vld [vmem:[#allocation2 + $0xa8] sm:$0xff] }
  0xb4   : > { %1290 = vmatprep.subr.bf16.mxu0 %v1637_v19  ;;  %1468 = vmatprep.subr.bf16.mxu1 %v1637_v19  ;;  %v322_v19 = vld [vmem:[%s2126_s14 + $0xa0] sm:$0xff] }
  0xb7   : > { %1291 = vmatpush3.bf16.msra.mxu0 %v1638_v20  ;;  %1476 = vmatpush3.bf16.msra.mxu1 %v1638_v20  ;;  %v324_v20 = vld [vmem:[%s2126_s14 + $0xb0] sm:$0xff] }
  0xb8   : > { %1292 = vmatprep.subr.bf16.mxu0 %v1639_v21  ;;  %1469 = vmatprep.subr.bf16.mxu1 %v1639_v21  ;;  %v354_v21 = vld [vmem:[%s2126_s14 + $0x1a0] sm:$0xff]  ;;  %v376_v27 = vpack.c.bf16 %v324_v20, %v322_v19 }
  0xb9   : > { %v392_v28 = vpack.c.bf16 %v356_v22, %v354_v21 }
  0xbb   : > { %1293 = vmatpush3.bf16.msra.mxu0 %v1640_v25  ;;  %1477 = vmatpush3.bf16.msra.mxu1 %v1640_v25  ;;  %v359_v25 = vld [vmem:[%s2126_s14 + $0x1c8] sm:$0xff] }
  0xbc   : > { %v395_v30 = vpack.c.bf16 %v361_v26, %v359_v25 }
  0xbe   : > { %596 = vmatmul.mubr.bf16.vlgmr.msra.gmra.mrb[0].mxu0 %v366_v31  ;;  %660 = vmatmul.mubr.bf16.vlgmr.msra.gmra.mrb[0].mxu1 %v382_v32  ;;  %v326_v31 = vld [vmem:[%s2126_s14 + $0xc0] sm:$0xff]  ;;  %v328_v32 = vld [vmem:[%s2126_s14 + $0xd0] sm:$0xff] }
  0xbf   : > { %603 = vmatprep.mubr.bf16.mxu0 %v369_v33  ;;  %667 = vmatprep.mubr.bf16.mxu1 %v385_v34  ;;  %v358_v33 = vld [vmem:[%s2126_s14 + $0x1c0] sm:$0xff]  ;;  %v360_v34 = vld [vmem:[%s2126_s14 + $0x1d0] sm:$0xff]  ;;  %v378_v39 = vpack.c.bf16 %v328_v32, %v326_v31 }
  0xc0   : > { %v394_v40 = vpack.c.bf16 %v360_v34, %v358_v33 }
  0xc6   : > { %604 = vmatmul.mubr.bf16.gmra.mrb[4].mxu0 %v368_v43  ;;  %668 = vmatmul.mubr.bf16.gmra.mrb[4].mxu1 %v384_v44  ;;  %v330_v43 = vld [vmem:[%s2126_s14 + $0xe0] sm:$0xff]  ;;  %v332_v44 = vld [vmem:[%s2126_s14 + $0xf0] sm:$0xff] }
  0xc7   : > { %611 = vmatprep.mubr.bf16.mxu0 %v371_v45  ;;  %675 = vmatprep.mubr.bf16.mxu1 %v387_v46  ;;  %v362_v45 = vld [vmem:[%s2126_s14 + $0x1e0] sm:$0xff]  ;;  %v364_v46 = vld [vmem:[%s2126_s14 + $0x1f0] sm:$0xff]  ;;  %v380_v47 = vpack.c.bf16 %v332_v44, %v330_v43 }
  0xc8   : > { %v396_v48 = vpack.c.bf16 %v364_v46, %v362_v45 }
  0xce   : > { %612 = vmatmul.mubr.bf16.gmra.mrb[8].mxu0 %v370_v55  ;;  %676 = vmatmul.mubr.bf16.gmra.mrb[8].mxu1 %v386_v56 }
  0xcf   : > { %619 = vmatprep.mubr.bf16.mxu0 %v373_v57  ;;  %683 = vmatprep.mubr.bf16.mxu1 %v389_v58 }
  0xd6   : > { %620 = vmatmul.mubr.bf16.gmra.mrb[12].mxu0 %v372_v3  ;;  %684 = vmatmul.mubr.bf16.gmra.mrb[12].mxu1 %v388_v4 }
  0xd7   : > { %627 = vmatprep.mubr.bf16.mxu0 %v375_v5  ;;  %691 = vmatprep.mubr.bf16.mxu1 %v391_v6 }
  0xde   : > { %628 = vmatmul.mubr.bf16.gmra.mrb[16].mxu0 %v374_v15  ;;  %692 = vmatmul.mubr.bf16.gmra.mrb[16].mxu1 %v390_v16  ;;  %v438_v15 = vld [vmem:[#allocation2 + $0x18] sm:$0xff] }
  0xdf   : > { %635 = vmatprep.mubr.bf16.mxu0 %v377_v17  ;;  %699 = vmatprep.mubr.bf16.mxu1 %v393_v18  ;;  %v454_v17 = vld [vmem:[#allocation2 + $0x98] sm:$0xff] }
  0xe6   : > { %636 = vmatmul.mubr.bf16.gmra.mrb[20].mxu0 %v376_v27  ;;  %700 = vmatmul.mubr.bf16.gmra.mrb[20].mxu1 %v392_v28  ;;  %v439_v27 = vld [vmem:[#allocation2 + $0x20] sm:$0xff] }
  0xe7   : > { %643 = vmatprep.mubr.bf16.mxu0 %v379_v29  ;;  %707 = vmatprep.mubr.bf16.mxu1 %v395_v30  ;;  %v455_v29 = vld [vmem:[#allocation2 + $0xa0] sm:$0xff] }
  0xee   : > { %644 = vmatmul.mubr.bf16.gmra.mrb[24].mxu0 %v378_v39  ;;  %708 = vmatmul.mubr.bf16.gmra.mrb[24].mxu1 %v394_v40 }
  0xef   : > { %651 = vmatprep.mubr.bf16.mxu0 %v381_v41  ;;  %715 = vmatprep.mubr.bf16.mxu1 %v397_v42 }
  0xf6   : > { %652 = vmatmul.mubr.bf16.gmra.mrb[28].mxu0 %v380_v47  ;;  %716 = vmatmul.mubr.bf16.gmra.mrb[28].mxu1 %v396_v48  ;;  %v441_v47 = vld [vmem:[#allocation2 + $0x30] sm:$0xff] }
 0x191   : > { %v1294_v49 = vpop.f32.mrb[0].mxu0  ;;  %v1342_v50 = vpop.f32.mrb[0].mxu1 }
 0x192   : > { %v1295_v52 = vpop.f32.mrb[1].mxu0  ;;  %v1343_v54 = vpop.f32.mrb[1].mxu1 }
 0x193   : > { %v1296_v55 = vadd.f32 %v1295_v52, %v1294_v49  ;;  %v1344_v56 = vadd.f32 %v1343_v54, %v1342_v50  ;;  %v1297_v57 = vpop.f32.mrb[2].mxu0  ;;  %v1345_v58 = vpop.f32.mrb[2].mxu1  ;;  %v457_v49 = vld [vmem:[#allocation2 + $0xb0] sm:$0xff] }
 0x194   : > { %v1298_v60 = vpop.f32.mrb[3].mxu0  ;;  %v1346_v62 = vpop.f32.mrb[3].mxu1 }
 0x195   : > { %v724_v63 = vadd.f32 %v1296_v55, %v435_v51  ;;  %v740_v0 = vadd.f32 %v1344_v56, %v451_v53  ;;  %v1299_v1 = vadd.f32 %v1298_v60, %v1297_v57  ;;  %v1347_v2 = vadd.f32 %v1346_v62, %v1345_v58  ;;  %v442_v55 = vld [vmem:[#allocation2 + $0x38] sm:$0xff] }
 0x196   : > { %v458_v57 = vld [vmem:[#allocation2 + $0xb8] sm:$0xff] }
 0x197   : > { %756 = vst [vmem:[#allocation2] sm:$0xff] %v724_v63  ;;  %772 = vst [vmem:[#allocation2 + $0x80] sm:$0xff] %v740_v0  ;;  %v725_v3 = vadd.f32 %v1299_v1, %v436_v59  ;;  %v741_v4 = vadd.f32 %v1347_v2, %v452_v61 }
 0x199   : > { %757 = vst [vmem:[#allocation2 + $0x8] sm:$0xff] %v725_v3  ;;  %773 = vst [vmem:[#allocation2 + $0x88] sm:$0xff] %v741_v4  ;;  %v1300_v5 = vpop.f32.mrb[4].mxu0  ;;  %v1348_v6 = vpop.f32.mrb[4].mxu1  ;;  %v443_v3 = vld [vmem:[#allocation2 + $0x40] sm:$0xff] }
 0x19a   : > { %v1301_v8 = vpop.f32.mrb[5].mxu0  ;;  %v1349_v10 = vpop.f32.mrb[5].mxu1 }
 0x19b   : > { %v1302_v11 = vadd.f32 %v1301_v8, %v1300_v5  ;;  %v1350_v12 = vadd.f32 %v1349_v10, %v1348_v6  ;;  %v1303_v13 = vpop.f32.mrb[6].mxu0  ;;  %v1351_v14 = vpop.f32.mrb[6].mxu1  ;;  %v459_v5 = vld [vmem:[#allocation2 + $0xc0] sm:$0xff] }
 0x19c   : > { %v1304_v16 = vpop.f32.mrb[7].mxu0  ;;  %v1352_v18 = vpop.f32.mrb[7].mxu1 }
 0x19d   : > { %v726_v19 = vadd.f32 %v1302_v11, %v437_v7  ;;  %v742_v20 = vadd.f32 %v1350_v12, %v453_v9  ;;  %v1305_v21 = vadd.f32 %v1304_v16, %v1303_v13  ;;  %v1353_v22 = vadd.f32 %v1352_v18, %v1351_v14  ;;  %v444_v11 = vld [vmem:[#allocation2 + $0x48] sm:$0xff] }
 0x19e   : > { %v460_v13 = vld [vmem:[#allocation2 + $0xc8] sm:$0xff] }
 0x19f   : > { %758 = vst [vmem:[#allocation2 + $0x10] sm:$0xff] %v726_v19  ;;  %774 = vst [vmem:[#allocation2 + $0x90] sm:$0xff] %v742_v20  ;;  %v727_v23 = vadd.f32 %v1305_v21, %v438_v15  ;;  %v743_v24 = vadd.f32 %v1353_v22, %v454_v17 }
 0x1a1   : > { %759 = vst [vmem:[#allocation2 + $0x18] sm:$0xff] %v727_v23  ;;  %775 = vst [vmem:[#allocation2 + $0x98] sm:$0xff] %v743_v24  ;;  %v1306_v25 = vpop.f32.mrb[8].mxu0  ;;  %v1354_v26 = vpop.f32.mrb[8].mxu1  ;;  %v445_v23 = vld [vmem:[#allocation2 + $0x50] sm:$0xff] }
 0x1a2   : > { %v1307_v28 = vpop.f32.mrb[9].mxu0  ;;  %v1355_v30 = vpop.f32.mrb[9].mxu1 }
 0x1a3   : > { %v1308_v31 = vadd.f32 %v1307_v28, %v1306_v25  ;;  %v1356_v32 = vadd.f32 %v1355_v30, %v1354_v26  ;;  %v1309_v33 = vpop.f32.mrb[10].mxu0  ;;  %v1357_v34 = vpop.f32.mrb[10].mxu1  ;;  %v461_v25 = vld [vmem:[#allocation2 + $0xd0] sm:$0xff] }
 0x1a4   : > { %v1310_v36 = vpop.f32.mrb[11].mxu0  ;;  %v1358_v38 = vpop.f32.mrb[11].mxu1 }
 0x1a5   : > { %v728_v39 = vadd.f32 %v1308_v31, %v439_v27  ;;  %v744_v40 = vadd.f32 %v1356_v32, %v455_v29  ;;  %v1311_v41 = vadd.f32 %v1310_v36, %v1309_v33  ;;  %v1359_v42 = vadd.f32 %v1358_v38, %v1357_v34  ;;  %v446_v31 = vld [vmem:[#allocation2 + $0x58] sm:$0xff] }
 0x1a6   : > { %v462_v33 = vld [vmem:[#allocation2 + $0xd8] sm:$0xff] }
 0x1a7   : > { %760 = vst [vmem:[#allocation2 + $0x20] sm:$0xff] %v728_v39  ;;  %776 = vst [vmem:[#allocation2 + $0xa0] sm:$0xff] %v744_v40  ;;  %v729_v43 = vadd.f32 %v1311_v41, %v440_v35  ;;  %v745_v44 = vadd.f32 %v1359_v42, %v456_v37 }
 0x1a9   : > { %761 = vst [vmem:[#allocation2 + $0x28] sm:$0xff] %v729_v43  ;;  %777 = vst [vmem:[#allocation2 + $0xa8] sm:$0xff] %v745_v44  ;;  %v1312_v45 = vpop.f32.mrb[12].mxu0  ;;  %v1360_v46 = vpop.f32.mrb[12].mxu1  ;;  %v447_v43 = vld [vmem:[#allocation2 + $0x60] sm:$0xff] }
 0x1aa   : > { %v1313_v48 = vpop.f32.mrb[13].mxu0  ;;  %v1361_v50 = vpop.f32.mrb[13].mxu1 }
 0x1ab   : > { %v1314_v51 = vadd.f32 %v1313_v48, %v1312_v45  ;;  %v1362_v52 = vadd.f32 %v1361_v50, %v1360_v46  ;;  %v1315_v53 = vpop.f32.mrb[14].mxu0  ;;  %v1363_v54 = vpop.f32.mrb[14].mxu1  ;;  %v463_v45 = vld [vmem:[#allocation2 + $0xe0] sm:$0xff] }
 0x1ac   : > { %v1316_v56 = vpop.f32.mrb[15].mxu0  ;;  %v1364_v58 = vpop.f32.mrb[15].mxu1 }
 0x1ad   : > { %v730_v59 = vadd.f32 %v1314_v51, %v441_v47  ;;  %v746_v60 = vadd.f32 %v1362_v52, %v457_v49  ;;  %v1317_v61 = vadd.f32 %v1316_v56, %v1315_v53  ;;  %v1365_v62 = vadd.f32 %v1364_v58, %v1363_v54  ;;  %v448_v51 = vld [vmem:[#allocation2 + $0x68] sm:$0xff] }
 0x1ae   : > { %v464_v53 = vld [vmem:[#allocation2 + $0xe8] sm:$0xff] }
 0x1af   : > { %762 = vst [vmem:[#allocation2 + $0x30] sm:$0xff] %v730_v59  ;;  %778 = vst [vmem:[#allocation2 + $0xb0] sm:$0xff] %v746_v60  ;;  %v731_v63 = vadd.f32 %v1317_v61, %v442_v55  ;;  %v747_v0 = vadd.f32 %v1365_v62, %v458_v57 }
 0x1b1   : > { %763 = vst [vmem:[#allocation2 + $0x38] sm:$0xff] %v731_v63  ;;  %779 = vst [vmem:[#allocation2 + $0xb8] sm:$0xff] %v747_v0  ;;  %v1318_v1 = vpop.f32.mrb[16].mxu0  ;;  %v1366_v2 = vpop.f32.mrb[16].mxu1  ;;  %v449_v63 = vld [vmem:[#allocation2 + $0x70] sm:$0xff] }
 0x1b2   : > { %v1319_v4 = vpop.f32.mrb[17].mxu0  ;;  %v1367_v6 = vpop.f32.mrb[17].mxu1 }
 0x1b3   : > { %v1320_v7 = vadd.f32 %v1319_v4, %v1318_v1  ;;  %v1368_v8 = vadd.f32 %v1367_v6, %v1366_v2  ;;  %v1321_v9 = vpop.f32.mrb[18].mxu0  ;;  %v1369_v10 = vpop.f32.mrb[18].mxu1  ;;  %v465_v1 = vld [vmem:[#allocation2 + $0xf0] sm:$0xff] }
 0x1b4   : > { %v1322_v12 = vpop.f32.mrb[19].mxu0  ;;  %v1370_v14 = vpop.f32.mrb[19].mxu1 }
 0x1b5   : > { %v732_v15 = vadd.f32 %v1320_v7, %v443_v3  ;;  %v748_v16 = vadd.f32 %v1368_v8, %v459_v5  ;;  %v1323_v17 = vadd.f32 %v1322_v12, %v1321_v9  ;;  %v1371_v18 = vadd.f32 %v1370_v14, %v1369_v10  ;;  %v450_v7 = vld [vmem:[#allocation2 + $0x78] sm:$0xff] }
 0x1b6   : > { %v466_v9 = vld [vmem:[#allocation2 + $0xf8] sm:$0xff] }
 0x1b7   : > { %764 = vst [vmem:[#allocation2 + $0x40] sm:$0xff] %v732_v15  ;;  %780 = vst [vmem:[#allocation2 + $0xc0] sm:$0xff] %v748_v16  ;;  %v733_v19 = vadd.f32 %v1323_v17, %v444_v11  ;;  %v749_v20 = vadd.f32 %v1371_v18, %v460_v13  ;;  %v1641_v17 = vld [vmem:[#allocation8] sm:$0xff] (!%p1261_p7)   ;;  %v1642_v18 = vld [vmem:[#allocation8 + $0x8] sm:$0xff] (!%p1261_p7)  }
 0x1b8   : > { %1414 = vmatprep.subr.bf16.mxu0 (!%p1261_p7), %v1641_v17  ;;  %1478 = vmatprep.subr.bf16.mxu1 (!%p1261_p7), %v1641_v17 }
 0x1b9   : > { %765 = vst [vmem:[#allocation2 + $0x48] sm:$0xff] %v733_v19  ;;  %781 = vst [vmem:[#allocation2 + $0xc8] sm:$0xff] %v749_v20  ;;  %v1324_v21 = vpop.f32.mrb[20].mxu0  ;;  %v1372_v22 = vpop.f32.mrb[20].mxu1  ;;  %1415 = vmatpush3.bf16.msra.mxu0 (!%p1261_p7), %v1641_v17  ;;  %1486 = vmatpush3.bf16.msra.mxu1 (!%p1261_p7), %v1641_v17  ;;  %v1643_v19 = vld [vmem:[#allocation8 + $0x10] sm:$0xff] (!%p1261_p7)   ;;  %v1644_v20 = vld [vmem:[#allocation8 + $0x18] sm:$0xff] (!%p1261_p7)  }
 0x1ba   : > { %v1325_v24 = vpop.f32.mrb[21].mxu0  ;;  %v1373_v26 = vpop.f32.mrb[21].mxu1  ;;  %1416 = vmatprep.subr.bf16.mxu0 (!%p1261_p7), %v1642_v18  ;;  %1479 = vmatprep.subr.bf16.mxu1 (!%p1261_p7), %v1642_v18 }
 0x1bb   : > { %v1326_v27 = vadd.f32 %v1325_v24, %v1324_v21  ;;  %v1374_v28 = vadd.f32 %v1373_v26, %v1372_v22  ;;  %v1327_v29 = vpop.f32.mrb[22].mxu0  ;;  %v1375_v30 = vpop.f32.mrb[22].mxu1  ;;  %v792_v21 = vld [vmem:[#allocation2] sm:$0xff] (!%p1261_p7)  ;;  %v793_v22 = vld [vmem:[#allocation2 + $0x8] sm:$0xff] (!%p1261_p7) }
 0x1bc   : > { %v1328_v32 = vpop.f32.mrb[23].mxu0  ;;  %v1376_v34 = vpop.f32.mrb[23].mxu1  ;;  %v824_v24 = vpack.c.bf16 (!%p1261_p7), %v793_v22, %v792_v21 }
 0x1bd   : > { %v734_v35 = vadd.f32 %v1326_v27, %v445_v23  ;;  %v750_v36 = vadd.f32 %v1374_v28, %v461_v25  ;;  %v1329_v37 = vadd.f32 %v1328_v32, %v1327_v29  ;;  %v1377_v38 = vadd.f32 %v1376_v34, %v1375_v30  ;;  %1417 = vmatpush3.bf16.msra.mxu0 (!%p1261_p7), %v1642_v18  ;;  %v808_v23 = vld [vmem:[#allocation2 + $0x80] sm:$0xff] (!%p1261_p7)  ;;  %v809_v25 = vld [vmem:[#allocation2 + $0x88] sm:$0xff] (!%p1261_p7)  ;;  %v1647_v29 = vld [vmem:[#allocation8 + $0x30] sm:$0xff] (!%p1261_p7)  }
 0x1be   : > { %1487 = vmatpush3.bf16.msra.mxu1 (!%p1261_p7), %v1642_v18  ;;  %1418 = vmatprep.subr.bf16.mxu0 (!%p1261_p7), %v1643_v19  ;;  %v832_v26 = vpack.c.bf16 (!%p1261_p7), %v809_v25, %v808_v23  ;;  %v1645_v27 = vld [vmem:[#allocation8 + $0x20] sm:$0xff] (!%p1261_p7)   ;;  %v1646_v28 = vld [vmem:[#allocation8 + $0x28] sm:$0xff] (!%p1261_p7)   ;;  %v1648_v30 = vld [vmem:[#allocation8 + $0x38] sm:$0xff] (!%p1261_p7)  }
 0x1bf   : > { %766 = vst [vmem:[#allocation2 + $0x50] sm:$0xff] %v734_v35  ;;  %782 = vst [vmem:[#allocation2 + $0xd0] sm:$0xff] %v750_v36  ;;  %v735_v39 = vadd.f32 %v1329_v37, %v446_v31  ;;  %v751_v40 = vadd.f32 %v1377_v38, %v462_v33  ;;  %1480 = vmatprep.subr.bf16.mxu1 (!%p1261_p7), %v1643_v19  ;;  %1430 = vmatprep.mubr.bf16.mxu0 (!%p1261_p7), %v824_v24  ;;  %v794_v31 = vld [vmem:[#allocation2 + $0x10] sm:$0xff] (!%p1261_p7)  ;;  %v795_v32 = vld [vmem:[#allocation2 + $0x18] sm:$0xff] (!%p1261_p7) }
 0x1c0   : > { %1446 = vmatprep.mubr.bf16.mxu1 (!%p1261_p7), %v832_v26  ;;  %v810_v33 = vld [vmem:[#allocation2 + $0x90] sm:$0xff] (!%p1261_p7)  ;;  %v811_v34 = vld [vmem:[#allocation2 + $0x98] sm:$0xff] (!%p1261_p7)  ;;  %v796_v35 = vld [vmem:[#allocation2 + $0x20] sm:$0xff] (!%p1261_p7) }
 0x1c1   : > { %767 = vst [vmem:[#allocation2 + $0x58] sm:$0xff] %v735_v39  ;;  %783 = vst [vmem:[#allocation2 + $0xd8] sm:$0xff] %v751_v40  ;;  %v1330_v41 = vpop.f32.mrb[24].mxu0  ;;  %v1378_v42 = vpop.f32.mrb[24].mxu1  ;;  %1419 = vmatpush3.bf16.msra.mxu0 (!%p1261_p7), %v1643_v19  ;;  %v797_v36 = vld [vmem:[#allocation2 + $0x28] sm:$0xff] (!%p1261_p7)  ;;  %v812_v37 = vld [vmem:[#allocation2 + $0xa0] sm:$0xff] (!%p1261_p7)  ;;  %v825_v39 = vpack.c.bf16 (!%p1261_p7), %v795_v32, %v794_v31  ;;  %v833_v40 = vpack.c.bf16 (!%p1261_p7), %v811_v34, %v810_v33 }
 0x1c2   : > { %v1331_v44 = vpop.f32.mrb[25].mxu0  ;;  %v1379_v46 = vpop.f32.mrb[25].mxu1  ;;  %1488 = vmatpush3.bf16.msra.mxu1 (!%p1261_p7), %v1643_v19  ;;  %1420 = vmatprep.subr.bf16.mxu0 (!%p1261_p7), %v1644_v20  ;;  %v813_v38 = vld [vmem:[#allocation2 + $0xa8] sm:$0xff] (!%p1261_p7) }
 0x1c3   : > { %v1332_v47 = vadd.f32 %v1331_v44, %v1330_v41  ;;  %v1380_v48 = vadd.f32 %v1379_v46, %v1378_v42  ;;  %v1333_v49 = vpop.f32.mrb[26].mxu0  ;;  %v1381_v50 = vpop.f32.mrb[26].mxu1  ;;  %1481 = vmatprep.subr.bf16.mxu1 (!%p1261_p7), %v1644_v20  ;;  %v826_v41 = vpack.c.bf16 (!%p1261_p7), %v797_v36, %v796_v35  ;;  %v834_v42 = vpack.c.bf16 (!%p1261_p7), %v813_v38, %v812_v37  ;;  %v799_v44 = vld [vmem:[#allocation2 + $0x38] sm:$0xff] (!%p1261_p7) }
 0x1c4   : > { %v1334_v52 = vpop.f32.mrb[27].mxu0  ;;  %v1382_v54 = vpop.f32.mrb[27].mxu1  ;;  %v815_v46 = vld [vmem:[#allocation2 + $0xb8] sm:$0xff] (!%p1261_p7) }
 0x1c5   : > { %v736_v55 = vadd.f32 %v1332_v47, %v447_v43  ;;  %v752_v56 = vadd.f32 %v1380_v48, %v463_v45  ;;  %v1335_v57 = vadd.f32 %v1334_v52, %v1333_v49  ;;  %v1383_v58 = vadd.f32 %v1382_v54, %v1381_v50  ;;  %1421 = vmatpush3.bf16.msra.mxu0 (!%p1261_p7), %v1644_v20  ;;  %v798_v43 = vld [vmem:[#allocation2 + $0x30] sm:$0xff] (!%p1261_p7)  ;;  %v800_v47 = vld [vmem:[#allocation2 + $0x40] sm:$0xff] (!%p1261_p7)  ;;  %v801_v48 = vld [vmem:[#allocation2 + $0x48] sm:$0xff] (!%p1261_p7) }
 0x1c6   : > { %1489 = vmatpush3.bf16.msra.mxu1 (!%p1261_p7), %v1644_v20  ;;  %1422 = vmatprep.subr.bf16.mxu0 (!%p1261_p7), %v1645_v27  ;;  %v814_v45 = vld [vmem:[#allocation2 + $0xb0] sm:$0xff] (!%p1261_p7)  ;;  %v816_v49 = vld [vmem:[#allocation2 + $0xc0] sm:$0xff] (!%p1261_p7)  ;;  %v817_v50 = vld [vmem:[#allocation2 + $0xc8] sm:$0xff] (!%p1261_p7) }
 0x1c7   : > { %768 = vst [vmem:[#allocation2 + $0x60] sm:$0xff] %v736_v55  ;;  %784 = vst [vmem:[#allocation2 + $0xe0] sm:$0xff] %v752_v56  ;;  %v737_v59 = vadd.f32 %v1335_v57, %v448_v51  ;;  %v753_v60 = vadd.f32 %v1383_v58, %v464_v53  ;;  %1482 = vmatprep.subr.bf16.mxu1 (!%p1261_p7), %v1645_v27  ;;  %v827_v51 = vpack.c.bf16 (!%p1261_p7), %v799_v44, %v798_v43  ;;  %v802_v55 = vld [vmem:[#allocation2 + $0x50] sm:$0xff] (!%p1261_p7) }
 0x1c8   : > { %v835_v52 = vpack.c.bf16 (!%p1261_p7), %v815_v46, %v814_v45  ;;  %v828_v53 = vpack.c.bf16 (!%p1261_p7), %v801_v48, %v800_v47  ;;  %v836_v54 = vpack.c.bf16 (!%p1261_p7), %v817_v50, %v816_v49  ;;  %v803_v56 = vld [vmem:[#allocation2 + $0x58] sm:$0xff] (!%p1261_p7)  ;;  %v818_v57 = vld [vmem:[#allocation2 + $0xd0] sm:$0xff] (!%p1261_p7) }
 0x1c9   : > { %769 = vst [vmem:[#allocation2 + $0x68] sm:$0xff] %v737_v59  ;;  %785 = vst [vmem:[#allocation2 + $0xe8] sm:$0xff] %v753_v60  ;;  %v1336_v61 = vpop.f32.mrb[28].mxu0  ;;  %v1384_v62 = vpop.f32.mrb[28].mxu1  ;;  %1423 = vmatpush3.bf16.msra.mxu0 (!%p1261_p7), %v1645_v27  ;;  %v819_v58 = vld [vmem:[#allocation2 + $0xd8] sm:$0xff] (!%p1261_p7) }
 0x1ca   : > { %v1337_v0 = vpop.f32.mrb[29].mxu0  ;;  %v1385_v2 = vpop.f32.mrb[29].mxu1  ;;  %1490 = vmatpush3.bf16.msra.mxu1 (!%p1261_p7), %v1645_v27  ;;  %1424 = vmatprep.subr.bf16.mxu0 (!%p1261_p7), %v1646_v28 }
 0x1cb   : > { %v1338_v3 = vadd.f32 %v1337_v0, %v1336_v61  ;;  %v1386_v4 = vadd.f32 %v1385_v2, %v1384_v62  ;;  %v1339_v5 = vpop.f32.mrb[30].mxu0  ;;  %v1387_v6 = vpop.f32.mrb[30].mxu1  ;;  %791 = sbr.rel (%p1261_p7) target bundleno = 715 (0x2cb), region = 56  ;;  %1483 = vmatprep.subr.bf16.mxu1 (!%p1261_p7), %v1646_v28  ;;  %v837_v0 = vpack.c.bf16 (!%p1261_p7), %v819_v58, %v818_v57 }
 0x1cc   : > { %v1340_v8 = vpop.f32.mrb[31].mxu0  ;;  %v1388_v10 = vpop.f32.mrb[31].mxu1 }
 0x1cd   : > { %v738_v11 = vadd.f32 %v1338_v3, %v449_v63  ;;  %v754_v12 = vadd.f32 %v1386_v4, %v465_v1  ;;  %v1341_v13 = vadd.f32 %v1340_v8, %v1339_v5  ;;  %v1389_v14 = vadd.f32 %v1388_v10, %v1387_v6  ;;  %1425 = vmatpush3.bf16.msra.mxu0 (!%p1261_p7), %v1646_v28 }
 0x1ce   : > { %1491 = vmatpush3.bf16.msra.mxu1 (!%p1261_p7), %v1646_v28  ;;  %1426 = vmatprep.subr.bf16.mxu0 (!%p1261_p7), %v1647_v29  ;;  %v804_v59 = vld [vmem:[#allocation2 + $0x60] sm:$0xff] (!%p1261_p7)  ;;  %v829_v63 = vpack.c.bf16 (!%p1261_p7), %v803_v56, %v802_v55 }
 0x1cf   : > { %770 = vst [vmem:[#allocation2 + $0x70] sm:$0xff] %v738_v11  ;;  %786 = vst [vmem:[#allocation2 + $0xf0] sm:$0xff] %v754_v12  ;;  %v739_v15 = vadd.f32 %v1341_v13, %v450_v7  ;;  %v755_v16 = vadd.f32 %v1389_v14, %v466_v9  ;;  %1484 = vmatprep.subr.bf16.mxu1 (!%p1261_p7), %v1647_v29  ;;  %v820_v61 = vld [vmem:[#allocation2 + $0xe0] sm:$0xff] (!%p1261_p7) }
 0x1d0   : > { %v805_v60 = vld [vmem:[#allocation2 + $0x68] sm:$0xff] (!%p1261_p7)  ;;  %v2229_v9 = vld [vmem:[%s2370_s3] ss:$0 sm:$0xff] (!%p1261_p7) }
 0x1d1   : > { %771 = vst [vmem:[#allocation2 + $0x78] sm:$0xff] %v739_v15  ;;  %787 = vst [vmem:[#allocation2 + $0xf8] sm:$0xff] %v755_v16  ;;  %1427 = vmatpush3.bf16.msra.mxu0 (!%p1261_p7), %v1647_v29  ;;  %v821_v62 = vld [vmem:[#allocation2 + $0xe8] sm:$0xff] (!%p1261_p7)  ;;  %v830_v1 = vpack.c.bf16 (!%p1261_p7), %v805_v60, %v804_v59 }
 0x1d2   : > { %1492 = vmatpush3.bf16.msra.mxu1 %v1647_v29  ;;  %1428 = vmatprep.subr.bf16.mxu0 %v1648_v30  ;;  %v838_v2 = vpack.c.bf16 %v821_v62, %v820_v61 }
 0x1d3   : > { %1485 = vmatprep.subr.bf16.mxu1 %v1648_v30 }
 0x1d5   : > { %1429 = vmatpush3.bf16.msra.mxu0 %v1648_v30 }
 0x1d6   : > { %1493 = vmatpush3.bf16.msra.mxu1 %v1648_v30  ;;  %v806_v3 = vld [vmem:[#allocation2 + $0x70] sm:$0xff] }
 0x1d7   : > { %v822_v5 = vld [vmem:[#allocation2 + $0xf0] sm:$0xff] }
 0x1d8   : > { %1431 = vmatmul.mubr.bf16.vlgmr.msra.gmra.mrb[0].mxu0 %v825_v39  ;;  %v807_v4 = vld [vmem:[#allocation2 + $0x78] sm:$0xff] }
 0x1d9   : > { %1447 = vmatmul.mubr.bf16.vlgmr.msra.gmra.mrb[0].mxu1 %v833_v40  ;;  %1434 = vmatprep.mubr.bf16.mxu0 %v826_v41  ;;  %v823_v6 = vld [vmem:[#allocation2 + $0xf8] sm:$0xff]  ;;  %v831_v7 = vpack.c.bf16 %v807_v4, %v806_v3 }
 0x1da   : > { %1450 = vmatprep.mubr.bf16.mxu1 %v834_v42  ;;  %v839_v8 = vpack.c.bf16 %v823_v6, %v822_v5 }
 0x1e0   : > { %1435 = vmatmul.mubr.bf16.gmra.mrb[4].mxu0 %v827_v51 }
 0x1e1   : > { %1451 = vmatmul.mubr.bf16.gmra.mrb[4].mxu1 %v835_v52  ;;  %1438 = vmatprep.mubr.bf16.mxu0 %v828_v53 }
 0x1e2   : > { %1454 = vmatprep.mubr.bf16.mxu1 %v836_v54 }
 0x1e8   : > { %1439 = vmatmul.mubr.bf16.gmra.mrb[8].mxu0 %v829_v63 }
 0x1e9   : > { %1455 = vmatmul.mubr.bf16.gmra.mrb[8].mxu1 %v837_v0  ;;  %1442 = vmatprep.mubr.bf16.mxu0 %v830_v1 }
 0x1ea   : > { %1458 = vmatprep.mubr.bf16.mxu1 %v838_v2 }
 0x1f0   : > { %1443 = vmatmul.mubr.bf16.gmra.mrb[12].mxu0 %v831_v7 }
 0x1f1   : > { %1459 = vmatmul.mubr.bf16.gmra.mrb[12].mxu1 %v839_v8 }
 0x2ab   : > { %v1432_v10 = vpop.f32.mrb[0].mxu0 }
 0x2ac   : > { %v1448_v11 = vpop.f32.mrb[0].mxu1  ;;  %v954_v12 = vadd.f32 %v1432_v10, %v2229_v9  ;;  %v945_v14 = vpop.f32.mrb[1].mxu0 }
 0x2ad   : > { %v1018_v13 = vadd.f32 %v1448_v11, %v2229_v9  ;;  %v1009_v15 = vpop.f32.mrb[1].mxu1  ;;  %v946_v16 = vadd.f32 %v2229_v9, %v945_v14  ;;  %v1433_v18 = vpop.f32.mrb[2].mxu0 }
 0x2ae   : > { %v1010_v17 = vadd.f32 %v2229_v9, %v1009_v15  ;;  %v1449_v19 = vpop.f32.mrb[2].mxu1  ;;  %1074 = vst [vmem:[%s2139_s13 + $0x10] sm:$0xff] %v954_v12  ;;  %v957_v20 = vadd.f32 %v1433_v18, %v2229_v9  ;;  %v948_v22 = vpop.f32.mrb[3].mxu0 }
 0x2af   : > { %1090 = vst [vmem:[%s2139_s13 + $0x90] sm:$0xff] %v1018_v13  ;;  %v1021_v21 = vadd.f32 %v1449_v19, %v2229_v9  ;;  %v1012_v23 = vpop.f32.mrb[3].mxu1  ;;  %1072 = vst [vmem:[%s2139_s13] sm:$0xff] %v946_v16  ;;  %v949_v24 = vadd.f32 %v2229_v9, %v948_v22 }
 0x2b0   : > { %1088 = vst [vmem:[%s2139_s13 + $0x80] sm:$0xff] %v1010_v17  ;;  %v1013_v25 = vadd.f32 %v2229_v9, %v1012_v23  ;;  %1075 = vst [vmem:[%s2139_s13 + $0x18] sm:$0xff] %v957_v20 }
 0x2b1   : > { %1091 = vst [vmem:[%s2139_s13 + $0x98] sm:$0xff] %v1021_v21  ;;  %1073 = vst [vmem:[%s2139_s13 + $0x8] sm:$0xff] %v949_v24 }
 0x2b2   : > { %1089 = vst [vmem:[%s2139_s13 + $0x88] sm:$0xff] %v1013_v25 }
 0x2b3   : > { %v1436_v26 = vpop.f32.mrb[4].mxu0 }
 0x2b4   : > { %v1452_v27 = vpop.f32.mrb[4].mxu1  ;;  %v970_v28 = vadd.f32 %v1436_v26, %v2229_v9  ;;  %v961_v30 = vpop.f32.mrb[5].mxu0 }
 0x2b5   : > { %v1034_v29 = vadd.f32 %v1452_v27, %v2229_v9  ;;  %v1025_v31 = vpop.f32.mrb[5].mxu1  ;;  %v962_v32 = vadd.f32 %v2229_v9, %v961_v30  ;;  %v1437_v34 = vpop.f32.mrb[6].mxu0 }
 0x2b6   : > { %v1026_v33 = vadd.f32 %v2229_v9, %v1025_v31  ;;  %v1453_v35 = vpop.f32.mrb[6].mxu1  ;;  %1078 = vst [vmem:[%s2139_s13 + $0x30] sm:$0xff] %v970_v28  ;;  %v973_v36 = vadd.f32 %v1437_v34, %v2229_v9  ;;  %v964_v38 = vpop.f32.mrb[7].mxu0 }
 0x2b7   : > { %1094 = vst [vmem:[%s2139_s13 + $0xb0] sm:$0xff] %v1034_v29  ;;  %v1037_v37 = vadd.f32 %v1453_v35, %v2229_v9  ;;  %v1028_v39 = vpop.f32.mrb[7].mxu1  ;;  %1076 = vst [vmem:[%s2139_s13 + $0x20] sm:$0xff] %v962_v32  ;;  %v965_v40 = vadd.f32 %v2229_v9, %v964_v38 }
 0x2b8   : > { %1092 = vst [vmem:[%s2139_s13 + $0xa0] sm:$0xff] %v1026_v33  ;;  %v1029_v41 = vadd.f32 %v2229_v9, %v1028_v39  ;;  %1079 = vst [vmem:[%s2139_s13 + $0x38] sm:$0xff] %v973_v36 }
 0x2b9   : > { %1095 = vst [vmem:[%s2139_s13 + $0xb8] sm:$0xff] %v1037_v37  ;;  %1077 = vst [vmem:[%s2139_s13 + $0x28] sm:$0xff] %v965_v40 }
 0x2ba   : > { %1093 = vst [vmem:[%s2139_s13 + $0xa8] sm:$0xff] %v1029_v41 }
 0x2bb   : > { %v1440_v42 = vpop.f32.mrb[8].mxu0 }
 0x2bc   : > { %v1456_v43 = vpop.f32.mrb[8].mxu1  ;;  %v986_v44 = vadd.f32 %v1440_v42, %v2229_v9  ;;  %v977_v46 = vpop.f32.mrb[9].mxu0 }
 0x2bd   : > { %v1050_v45 = vadd.f32 %v1456_v43, %v2229_v9  ;;  %v1041_v47 = vpop.f32.mrb[9].mxu1  ;;  %v978_v48 = vadd.f32 %v2229_v9, %v977_v46  ;;  %v1441_v50 = vpop.f32.mrb[10].mxu0 }
 0x2be   : > { %v1042_v49 = vadd.f32 %v2229_v9, %v1041_v47  ;;  %v1457_v51 = vpop.f32.mrb[10].mxu1  ;;  %1082 = vst [vmem:[%s2139_s13 + $0x50] sm:$0xff] %v986_v44  ;;  %v989_v52 = vadd.f32 %v1441_v50, %v2229_v9  ;;  %v980_v54 = vpop.f32.mrb[11].mxu0 }
 0x2bf   : > { %1098 = vst [vmem:[%s2139_s13 + $0xd0] sm:$0xff] %v1050_v45  ;;  %v1053_v53 = vadd.f32 %v1457_v51, %v2229_v9  ;;  %v1044_v55 = vpop.f32.mrb[11].mxu1  ;;  %1080 = vst [vmem:[%s2139_s13 + $0x40] sm:$0xff] %v978_v48  ;;  %v981_v56 = vadd.f32 %v2229_v9, %v980_v54 }
 0x2c0   : > { %1096 = vst [vmem:[%s2139_s13 + $0xc0] sm:$0xff] %v1042_v49  ;;  %v1045_v57 = vadd.f32 %v2229_v9, %v1044_v55  ;;  %1083 = vst [vmem:[%s2139_s13 + $0x58] sm:$0xff] %v989_v52 }
 0x2c1   : > { %1099 = vst [vmem:[%s2139_s13 + $0xd8] sm:$0xff] %v1053_v53  ;;  %1081 = vst [vmem:[%s2139_s13 + $0x48] sm:$0xff] %v981_v56 }
 0x2c2   : > { %1097 = vst [vmem:[%s2139_s13 + $0xc8] sm:$0xff] %v1045_v57 }
 0x2c3   : > { %v1444_v58 = vpop.f32.mrb[12].mxu0 }
 0x2c4   : > { %v1460_v59 = vpop.f32.mrb[12].mxu1  ;;  %v1002_v60 = vadd.f32 %v1444_v58, %v2229_v9  ;;  %v993_v62 = vpop.f32.mrb[13].mxu0 }
 0x2c5   : > { %v1066_v61 = vadd.f32 %v1460_v59, %v2229_v9  ;;  %v1057_v63 = vpop.f32.mrb[13].mxu1  ;;  %v994_v0 = vadd.f32 %v2229_v9, %v993_v62  ;;  %v1445_v2 = vpop.f32.mrb[14].mxu0 }
 0x2c6   : > { %v1058_v1 = vadd.f32 %v2229_v9, %v1057_v63  ;;  %v1461_v3 = vpop.f32.mrb[14].mxu1  ;;  %1086 = vst [vmem:[%s2139_s13 + $0x70] sm:$0xff] %v1002_v60  ;;  %v1005_v4 = vadd.f32 %v1445_v2, %v2229_v9  ;;  %v996_v6 = vpop.f32.mrb[15].mxu0 }
 0x2c7   : > { %1102 = vst [vmem:[%s2139_s13 + $0xf0] sm:$0xff] %v1066_v61  ;;  %v1069_v5 = vadd.f32 %v1461_v3, %v2229_v9  ;;  %v1060_v7 = vpop.f32.mrb[15].mxu1  ;;  %1084 = vst [vmem:[%s2139_s13 + $0x60] sm:$0xff] %v994_v0  ;;  %v997_v8 = vadd.f32 %v2229_v9, %v996_v6 }
 0x2c8   : > { %1100 = vst [vmem:[%s2139_s13 + $0xe0] sm:$0xff] %v1058_v1  ;;  %v1061_v10 = vadd.f32 %v2229_v9, %v1060_v7  ;;  %1087 = vst [vmem:[%s2139_s13 + $0x78] sm:$0xff] %v1005_v4 }
 0x2c9   : > { %1103 = vst [vmem:[%s2139_s13 + $0xf8] sm:$0xff] %v1069_v5  ;;  %1085 = vst [vmem:[%s2139_s13 + $0x68] sm:$0xff] %v997_v8 }
 0x2ca   : > { %1101 = vst [vmem:[%s2139_s13 + $0xe8] sm:$0xff] %v1061_v10 }
 0x2cb PF: > { %s1277_s11 = sshll.u32 %s1849_s22, 12  ;;  %s2405_s27 = sld [smem:[#allocation20_spill]] }
 0x2cc   : > { %s1118_s1 = sshll.u32 %s2139_s13, 4  ;;  %s2306_s18 = scalar_lea.sflag [#allocation5], %s259_s2  ;;  %s2302_s1 = int_to_ptr.vmem [resolvable:$true] %s1118_s1 }
 0x2cd   : > { %s1735_s25 = scalar_lea.vmem %s2302_s1, 4096  ;;  %p2406_p9 = scmp.ne.s32.totalorder %s2392_s7, 0 }
 0x2ce   : > { %p1736_p6 = scmp.ne.s32.totalorder %s2302_s1, %s1735_s25  ;;  %s1872_s22 = smov [#allocation9]  }
 0x2cf   : > { %s1739_s28 = sshll.u32 %s1872_s22, 4  ;;  %s1740_s28 = int_to_ptr.vmem [resolvable:$false] %s1739_s28 }
 0x2d0   : > { %p1737_p10 = pnand %p1736_p6, %p2406_p9  ;;  %s1741_s14 = scalar_lea.vmem %s1740_s28, 8192 }
 0x2d1   : > { %s2299_s5 = scalar_lea.hbm %s2405_s27, %s1277_s11  ;;  %p1742_p12 = scmp.lt.s32.totalorder %s2302_s1, %s1740_s28 }
 0x2d2   : > { %p1738_p5 = pneg %p1737_p10  ;;  %p1743_p11 = scmp.lt.s32.totalorder %s1741_s14, %s1735_s25 }
 0x2d4   : > { %p1744_p1 = por %p1743_p11, %p1742_p12 }
 0x2d6   : > { %p1745_p8 = pnand %p1744_p1, %p1738_p5 }
 0x2d8   : > { %1748 = shalt.err (!%p1745_p8)
}
 0x2d9   : > { %s1749_s2 = scalar_lea.hbm %s2299_s5, 4096  ;;  %s1753_s29 = scalar_lea.hbm %s2405_s27, 8192 }
 0x2da   : > { %p1750_p4 = scmp.ne.s32.totalorder %s2299_s5, %s1749_s2  ;;  %p1754_p2 = scmp.lt.u32.totalorder %s2299_s5, %s2405_s27 }
 0x2db   : > { %p1755_p0 = scmp.lt.u32.totalorder %s1753_s29, %s1749_s2  ;;  %p1757_p6 = scmp.lt.u32.totalorder %s1749_s2, %s2299_s5 }
 0x2dc   : > { %p1751_p3 = pnand %p1750_p4, %p2406_p9 }
 0x2dd   : > { %p1756_p7 = por %p1755_p0, %p1754_p2 }
 0x2de   : > { %p1752_p13 = pneg %p1751_p3 }
 0x2df   : > { %p1758_p10 = por %p1757_p6, %p1756_p7 }
 0x2e1   : > { %p1759_p5 = pnand %p1758_p10, %p1752_p13 }
 0x2e3   : > { %1762 = shalt.err (!%p1759_p5)
}
 0x2e4   : > { %s1873_s12 = smov 128   ;;  %s1874_s21 = smov 8  }
 0x2e5   : > { %1504 = dma.vmem_to_hbm [thread:$0]  (%p2406_p9), %s2302_s1, 4096, %s2299_s5, %s2306_s18, %s1873_s12, %s1873_s12, %s1874_s21  }
 0x2e6 PF: > { %s2407_s26 = sld [smem:[#allocation15_spill]]  ;;  %s2408_s11 = sld [smem:[#allocation13_spill]] }
 0x2e7   : > { %s2409_s4 = sld [smem:[#allocation16_spill]] }
 0x2ec   : > { %p1526_p12 = scmp.ge.s32.totalorder %s2407_s26, 2  ;;  %s1133_s15 = sand.u32 1, %s2408_s11  }
 0x2ed   : > { %p2410_p11 = scmp.ne.s32.totalorder %s2409_s4, 0  ;;  %s1134_s25 = scalar_lea.sflag [#allocation5], %s1133_s15 }
 0x2ef   : > { %p1518_p1 = pnand %p1526_p12, %p2410_p11 }
 0x2f1   : > { %1816 = dma.done.wait (!%p1518_p1), %s1134_s25, 4096  }
 0x2f2   : > { %1818 = vsyncadd (!%p1518_p1), %s1134_s25, 4294963200  ;;  %s21_s25 = sadd.s32 1, %s2407_s26   ;;  %s2411_s21 = sld [smem:[#allocation14_spill]] }
 0x2f3   : > { %p18_p8 = scmp.ge.s32.totalorder %s21_s25, 6   ;;  %s2412_s7 = sld [smem:[#allocation17_spill]] }
 0x2f4   : > { %s2413_s15 = smov %s1825_s16  ;;  %s2414_s16 = smov %s1829_s17 }
 0x2f5   : > { %s2415_s17 = smov %s2086_s23  ;;  %s2416_s18 = smov %s1837_s19 }
 0x2f6   : > { %s2417_s19 = smov %s1841_s20  ;;  %s2418_s20 = smov %s2091_s10 }
 0x2f7   : > { %s2419_s22 = smov %s1857_s24  ;;  %s2421_s24 = smov %s2427_s8 }
 0x2f8   :  { %20 = sbr.rel (!%p18_p8) target bundleno = 14 (0xe), region = 98 }
 0x2f9   : > { %s2420_s23 = smov %s2412_s7 }
 0x2ff   :  { %1139 = vsyncpa [#allocation4], 1 }
 0x300   :  { %1141 = vsyncpa [#allocation4 + $0x1], 1 }
 0x301   :  { %1142 = vsyncpa [#allocation7], 1 }
 0x302   :  { %1143 = vsyncpa [#allocation5], 1 }
 0x303   :  { %1145 = vsyncpa [#allocation5 + $0x1], 1 }

</bundles_post_ra>
